<compile_context>
chip_gen: v5e
topology: v5e:2x2
jax: 0.10.0
libtpu: 0.0.40
codegen_flags: <defaults>
</compile_context>

<pallas_src>
import functools

import jax
import jax.numpy as jnp
from jax import lax
from jax.experimental import pallas as pl
from jax.experimental.pallas import tpu as pltpu


# ----------------------------------------------------------------------------
# Kernel 1: one depth tap of the 3x3x3 conv + BN partial statistics.
#
# Grid (N, D, 3).  For grid step (n, d, kd):
#   x_ref     : (Cin, Lp)     flattened zero-padded plane at padded depth d+kd,
#                             Lp = (H+3)*(W+2); taps are contiguous lane slices.
#   w_ref     : (Cout, 9*Cin) weights of depth tap kd, columns ordered (kh, kw, cin).
#   mask_ref  : (1, Mp)       1.0 on valid lanes (w < W), 0.0 on W-padding lanes.
#   y_ref     : (Cout, Mp)    raw conv output block, Mp = H*(W+2); resident across kd.
#   stats_ref : (Cout, 2)     per-(n, d) per-channel [sum, sum of squares].
# ----------------------------------------------------------------------------
def _conv3d_tap_kernel(x_ref, w_ref, mask_ref, y_ref, stats_ref, *, Cin, H, W, Wp):
    kd = pl.program_id(2)
    n_kd = pl.num_programs(2)
    Mp = H * Wp

    # Build this depth tap's im2col contribution in VMEM: 9 contiguous lane slices
    # of the flattened padded plane, one MXU matmul each, accumulated in registers.
    acc = None
    for t in range(9):
        kh, kw = t // 3, t % 3
        start = kh * Wp + kw
        tap = x_ref[:, start:start + Mp]            # (Cin, Mp), contiguous lane slice
        wt = w_ref[:, t * Cin:(t + 1) * Cin]        # (Cout, Cin)
        p = jnp.dot(wt, tap, preferred_element_type=jnp.float32)
        acc = p if acc is None else acc + p

    # Accumulate the 3 depth taps into the resident output block (P3 pattern).
    @pl.when(kd == 0)
    def _():
        y_ref[...] = jnp.zeros_like(y_ref)

    y_ref[...] += acc

    # After the last depth tap, emit BN partial statistics over the valid lanes only.
    @pl.when(kd == n_kd - 1)
    def _():
        yv = y_ref[...] * mask_ref[...]
        stats_ref[:, 0:1] = jnp.sum(yv, axis=1, keepdims=True)
        stats_ref[:, 1:2] = jnp.sum(yv * yv, axis=1, keepdims=True)


# ----------------------------------------------------------------------------
# Kernel 2: BatchNorm (folded scale/shift) + LeakyReLU(0.1), lane-dense elementwise.
# ----------------------------------------------------------------------------
def _bn_lrelu_kernel(y_ref, scale_ref, shift_ref, o_ref):
    z = y_ref[...] * scale_ref[...] + shift_ref[...]     # (Cout, Mp) * (Cout, 1)
    o_ref[...] = jnp.where(z >= 0.0, z, 0.1 * z)


# ----------------------------------------------------------------------------
# One (Conv3d 3x3x3 pad=1 -> training-mode BatchNorm3d -> LeakyReLU(0.1)) layer.
# a_ncdhw: (N, C, D, H, W) f32  ->  (N, Cout, D, H, W) f32.
# ----------------------------------------------------------------------------
def _conv_bn_lrelu_layer(a_ncdhw, w_dhwio, gamma, beta, *, eps=1e-5):
    N, Cin, D, H, W = a_ncdhw.shape
    Cout = w_dhwio.shape[-1]
    Wp = W + 2
    Mp = H * Wp
    Lp = (H + 3) * Wp

    # Zero-pad D by (1,1), H by (1,2) (one slack row so every tap slice stays in
    # bounds after flattening), W by (1,1); flatten the (H+3, W+2) plane (free).
    xp = jnp.pad(a_ncdhw, ((0, 0), (0, 0), (1, 1), (1, 2), (1, 1)))
    xf = xp.reshape(N, Cin, D + 2, 1, Lp)

    # (kd, kh, kw, Cin, Cout) -> (kd, Cout, (kh, kw, Cin)) matching the tap order.
    w_mat = jnp.transpose(w_dhwio, (0, 4, 1, 2, 3)).reshape(3, Cout, 9 * Cin)

    # Lane-validity mask for the W-padding columns of the flattened plane.
    mask = (jnp.arange(Mp, dtype=jnp.int32) % Wp < W).astype(jnp.float32)
    mask = mask.reshape(1, Mp)

    kernel = functools.partial(_conv3d_tap_kernel, Cin=Cin, H=H, W=W, Wp=Wp)
    y_raw, stats = pl.pallas_call(
        kernel,
        out_shape=(jax.ShapeDtypeStruct((N, Cout, D, 1, Mp), jnp.float32),
                   jax.ShapeDtypeStruct((N, D, Cout, 2), jnp.float32)),
        grid_spec=pltpu.PrefetchScalarGridSpec(
            num_scalar_prefetch=0,
            grid=(N, D, 3),
            in_specs=[
                pl.BlockSpec((None, Cin, None, None, Lp),
                             lambda n, d, kd: (n, 0, d + kd, 0, 0)),
                pl.BlockSpec((None, Cout, 9 * Cin),
                             lambda n, d, kd: (kd, 0, 0)),
                pl.BlockSpec((1, Mp),
                             lambda n, d, kd: (0, 0)),
            ],
            out_specs=[
                pl.BlockSpec((None, Cout, None, None, Mp),
                             lambda n, d, kd: (n, 0, d, 0, 0)),
                pl.BlockSpec((None, None, Cout, 2),
                             lambda n, d, kd: (n, d, 0, 0)),
            ],
        ),
        compiler_params=pltpu.CompilerParams(
            dimension_semantics=("parallel", "parallel", "arbitrary")),
    )(xf, w_mat, mask)
    # TODO(synk): for very large H*W planes, additionally tile the Mp lane axis
    # (per-generation tile budget / vmem_limit_bytes) instead of one plane per step.

    # Two-phase BN, phase 2 setup (tiny, XLA): fold batch stats + affine params
    # into one per-channel scale/shift.  Conv bias omitted (cancelled by the mean).
    M = N * D * H * W
    mean = jnp.sum(stats[..., 0], axis=(0, 1)) / M
    var = jnp.sum(stats[..., 1], axis=(0, 1)) / M - mean * mean    # biased variance
    scale = gamma * lax.rsqrt(var + eps)
    shift = beta - mean * scale

    act = pl.pallas_call(
        _bn_lrelu_kernel,
        out_shape=jax.ShapeDtypeStruct((N, Cout, D, 1, Mp), jnp.float32),
        grid_spec=pltpu.PrefetchScalarGridSpec(
            num_scalar_prefetch=0,
            grid=(N, D),
            in_specs=[
                pl.BlockSpec((None, Cout, None, None, Mp),
                             lambda n, d: (n, 0, d, 0, 0)),
                pl.BlockSpec((Cout, 1), lambda n, d: (0, 0)),
                pl.BlockSpec((Cout, 1), lambda n, d: (0, 0)),
            ],
            out_specs=pl.BlockSpec((None, Cout, None, None, Mp),
                                   lambda n, d: (n, 0, d, 0, 0)),
        ),
        compiler_params=pltpu.CompilerParams(
            dimension_semantics=("parallel", "parallel")),
    )(y_raw, scale.reshape(Cout, 1), shift.reshape(Cout, 1))

    # Drop the W-padding lanes: (N, Cout, D, 1, H*(W+2)) -> (N, Cout, D, H, W).
    return act.reshape(N, Cout, D, H, Wp)[..., :W]


# ----------------------------------------------------------------------------
# ConvBlock3D forward (PyTorch NCDHW in / NCDHW out).
# ----------------------------------------------------------------------------
@jax.jit
def conv_block_3d(x_ncdhw, params):
    (w1, b1, g1, be1, w2, b2, g2, be2) = params
    # b1/b2 are deliberately unused: a per-channel bias before training-mode
    # BatchNorm is cancelled exactly by the batch-mean subtraction.
    del b1, b2
    x = x_ncdhw.astype(jnp.float32)
    y = _conv_bn_lrelu_layer(x, w1, g1, be1)
    y = _conv_bn_lrelu_layer(y, w2, g2, be2)
    return y
    # TODO(synk): BatchNorm running-mean/var buffer updates (module state) are not
    # produced; only the training-mode forward output is computed.


# ----------------------------------------------------------------------------
# Pure-JAX reference (includes the conv bias, verifying the BN cancellation).
# ----------------------------------------------------------------------------
def _ref_block(x_ncdhw, params):
    (w1, b1, g1, be1, w2, b2, g2, be2) = params
    x = jnp.transpose(x_ncdhw, (0, 2, 3, 4, 1)).astype(jnp.float32)  # NDHWC

    def conv(x, w, b):
        y = lax.conv_general_dilated(
            x, w, window_strides=(1, 1, 1), padding="SAME",
            dimension_numbers=("NDHWC", "DHWIO", "NDHWC"))
        return y + b

    def bn_lrelu(x, g, b):
        mean = jnp.mean(x, axis=(0, 1, 2, 3), keepdims=True)
        var = jnp.mean((x - mean) ** 2, axis=(0, 1, 2, 3), keepdims=True)
        y = (x - mean) * lax.rsqrt(var + 1e-5) * g + b
        return jnp.where(y >= 0, y, 0.1 * y)

    y = bn_lrelu(conv(x, w1, b1), g1, be1)
    y = bn_lrelu(conv(y, w2, b2), g2, be2)
    return jnp.transpose(y, (0, 4, 1, 2, 3))


def init_params(key, in_channels, out_channels):
    k1, k2, k3, k4 = jax.random.split(key, 4)
    fan1 = in_channels * 27
    fan2 = out_channels * 27
    # Weights stored as (kd, kh, kw, Cin, Cout) — DHWIO.
    w1 = jax.random.normal(k1, (3, 3, 3, in_channels, out_channels), jnp.float32) / jnp.sqrt(fan1)
    b1 = 0.01 * jax.random.normal(k2, (out_channels,), jnp.float32)
    w2 = jax.random.normal(k3, (3, 3, 3, out_channels, out_channels), jnp.float32) / jnp.sqrt(fan2)
    b2 = 0.01 * jax.random.normal(k4, (out_channels,), jnp.float32)
    g1 = jnp.ones((out_channels,), jnp.float32)     # BatchNorm default init
    be1 = jnp.zeros((out_channels,), jnp.float32)
    g2 = jnp.ones((out_channels,), jnp.float32)
    be2 = jnp.zeros((out_channels,), jnp.float32)
    return (w1, b1, g1, be1, w2, b2, g2, be2)


if __name__ == "__main__":
    key = jax.random.PRNGKey(0)
    kx, kp = jax.random.split(key)

    N, Cin, Cout, D, H, W = 2, 4, 8, 8, 8, 8
    x = jax.random.normal(kx, (N, Cin, D, H, W), jnp.float32)   # PyTorch NCDHW
    params = init_params(kp, Cin, Cout)

    out = conv_block_3d(x, params)
    out = jax.block_until_ready(out)
    assert out.shape == (N, Cout, D, H, W), out.shape

    ref = jax.block_until_ready(_ref_block(x, params))
    err = jnp.max(jnp.abs(out - ref))
    assert err < 1e-2, f"max abs error {err}"

    print("KERNEL_OK")
</pallas_src>

<mosaic_0001>
module attributes {stable_mosaic.version = 11 : i64} {
  func.func @_conv3d_tap_kernel(%arg0: i32, %arg1: i32, %arg2: i32, %arg3: memref<1x4x1x1x110xf32, #tpu.memory_space<vmem>>, %arg4: memref<1x8x36xf32, #tpu.memory_space<vmem>>, %arg5: memref<1x80xf32, #tpu.memory_space<vmem>>, %arg6: memref<1x8x1x1x80xf32, #tpu.memory_space<vmem>>, %arg7: memref<1x1x8x2xf32, #tpu.memory_space<vmem>>) attributes {dimension_semantics = [#tpu.dimension_semantics<parallel>, #tpu.dimension_semantics<parallel>, #tpu.dimension_semantics<arbitrary>], iteration_bounds = array<i64: 2, 8, 3>, scalar_prefetch = 0 : i64, scratch_operands = 0 : i64, tpu.core_type = #tpu.core_type<tc>, window_params = [{transform_indices = @transform_0, window_bounds = array<i64: 1, 4, 1, 1, 110>}, {transform_indices = @transform_1, window_bounds = array<i64: 1, 8, 36>}, {pipeline_mode = #tpu.pipeline_mode<synchronous>, transform_indices = @transform_2, window_bounds = array<i64: 1, 80>}, {transform_indices = @transform_3, window_bounds = array<i64: 1, 8, 1, 1, 80>}, {transform_indices = @transform_4, window_bounds = array<i64: 1, 1, 8, 2>}]} {
    %c0 = arith.constant 0 : index
    %c0_0 = arith.constant 0 : index
    %c0_1 = arith.constant 0 : index
    %c0_2 = arith.constant 0 : index
    %c0_3 = arith.constant 0 : index
    %0 = vector.load %arg3[%c0, %c0_0, %c0_1, %c0_2, %c0_3] : memref<1x4x1x1x110xf32, #tpu.memory_space<vmem>>, vector<1x4x1x1x80xf32>
    %1 = vector.shape_cast %0 : vector<1x4x1x1x80xf32> to vector<4x80xf32>
    %c0_4 = arith.constant 0 : index
    %c0_5 = arith.constant 0 : index
    %c0_6 = arith.constant 0 : index
    %2 = vector.load %arg4[%c0_4, %c0_5, %c0_6] : memref<1x8x36xf32, #tpu.memory_space<vmem>>, vector<1x8x4xf32>
    %3 = vector.shape_cast %2 : vector<1x8x4xf32> to vector<8x4xf32>
    %cst = arith.constant dense<0.000000e+00> : vector<8x80xf32>
    %4 = tpu.matmul %3, %1, %cst {dimension_numbers = #tpu.dot_dimension_numbers<[1], [0], [0], [1], [0, 0, 1, 1], [], []>} : vector<8x4xf32>, vector<4x80xf32>, vector<8x80xf32> -> vector<8x80xf32>
    %c0_7 = arith.constant 0 : index
    %c0_8 = arith.constant 0 : index
    %c0_9 = arith.constant 0 : index
    %c0_10 = arith.constant 0 : index
    %c1 = arith.constant 1 : index
    %5 = vector.load %arg3[%c0_7, %c0_8, %c0_9, %c0_10, %c1] : memref<1x4x1x1x110xf32, #tpu.memory_space<vmem>>, vector<1x4x1x1x80xf32>
    %6 = vector.shape_cast %5 : vector<1x4x1x1x80xf32> to vector<4x80xf32>
    %c0_11 = arith.constant 0 : index
    %c0_12 = arith.constant 0 : index
    %c4 = arith.constant 4 : index
    %7 = vector.load %arg4[%c0_11, %c0_12, %c4] : memref<1x8x36xf32, #tpu.memory_space<vmem>>, vector<1x8x4xf32>
    %8 = vector.shape_cast %7 : vector<1x8x4xf32> to vector<8x4xf32>
    %cst_13 = arith.constant dense<0.000000e+00> : vector<8x80xf32>
    %9 = tpu.matmul %8, %6, %cst_13 {dimension_numbers = #tpu.dot_dimension_numbers<[1], [0], [0], [1], [0, 0, 1, 1], [], []>} : vector<8x4xf32>, vector<4x80xf32>, vector<8x80xf32> -> vector<8x80xf32>
    %10 = arith.addf %4, %9 : vector<8x80xf32>
    %c0_14 = arith.constant 0 : index
    %c0_15 = arith.constant 0 : index
    %c0_16 = arith.constant 0 : index
    %c0_17 = arith.constant 0 : index
    %c2 = arith.constant 2 : index
    %11 = vector.load %arg3[%c0_14, %c0_15, %c0_16, %c0_17, %c2] : memref<1x4x1x1x110xf32, #tpu.memory_space<vmem>>, vector<1x4x1x1x80xf32>
    %12 = vector.shape_cast %11 : vector<1x4x1x1x80xf32> to vector<4x80xf32>
    %c0_18 = arith.constant 0 : index
    %c0_19 = arith.constant 0 : index
    %c8 = arith.constant 8 : index
    %13 = vector.load %arg4[%c0_18, %c0_19, %c8] : memref<1x8x36xf32, #tpu.memory_space<vmem>>, vector<1x8x4xf32>
    %14 = vector.shape_cast %13 : vector<1x8x4xf32> to vector<8x4xf32>
    %cst_20 = arith.constant dense<0.000000e+00> : vector<8x80xf32>
    %15 = tpu.matmul %14, %12, %cst_20 {dimension_numbers = #tpu.dot_dimension_numbers<[1], [0], [0], [1], [0, 0, 1, 1], [], []>} : vector<8x4xf32>, vector<4x80xf32>, vector<8x80xf32> -> vector<8x80xf32>
    %16 = arith.addf %10, %15 : vector<8x80xf32>
    %c0_21 = arith.constant 0 : index
    %c0_22 = arith.constant 0 : index
    %c0_23 = arith.constant 0 : index
    %c0_24 = arith.constant 0 : index
    %c10 = arith.constant 10 : index
    %17 = vector.load %arg3[%c0_21, %c0_22, %c0_23, %c0_24, %c10] : memref<1x4x1x1x110xf32, #tpu.memory_space<vmem>>, vector<1x4x1x1x80xf32>
    %18 = vector.shape_cast %17 : vector<1x4x1x1x80xf32> to vector<4x80xf32>
    %c0_25 = arith.constant 0 : index
    %c0_26 = arith.constant 0 : index
    %c12 = arith.constant 12 : index
    %19 = vector.load %arg4[%c0_25, %c0_26, %c12] : memref<1x8x36xf32, #tpu.memory_space<vmem>>, vector<1x8x4xf32>
    %20 = vector.shape_cast %19 : vector<1x8x4xf32> to vector<8x4xf32>
    %cst_27 = arith.constant dense<0.000000e+00> : vector<8x80xf32>
    %21 = tpu.matmul %20, %18, %cst_27 {dimension_numbers = #tpu.dot_dimension_numbers<[1], [0], [0], [1], [0, 0, 1, 1], [], []>} : vector<8x4xf32>, vector<4x80xf32>, vector<8x80xf32> -> vector<8x80xf32>
    %22 = arith.addf %16, %21 : vector<8x80xf32>
    %c0_28 = arith.constant 0 : index
    %c0_29 = arith.constant 0 : index
    %c0_30 = arith.constant 0 : index
    %c0_31 = arith.constant 0 : index
    %c11 = arith.constant 11 : index
    %23 = vector.load %arg3[%c0_28, %c0_29, %c0_30, %c0_31, %c11] : memref<1x4x1x1x110xf32, #tpu.memory_space<vmem>>, vector<1x4x1x1x80xf32>
    %24 = vector.shape_cast %23 : vector<1x4x1x1x80xf32> to vector<4x80xf32>
    %c0_32 = arith.constant 0 : index
    %c0_33 = arith.constant 0 : index
    %c16 = arith.constant 16 : index
    %25 = vector.load %arg4[%c0_32, %c0_33, %c16] : memref<1x8x36xf32, #tpu.memory_space<vmem>>, vector<1x8x4xf32>
    %26 = vector.shape_cast %25 : vector<1x8x4xf32> to vector<8x4xf32>
    %cst_34 = arith.constant dense<0.000000e+00> : vector<8x80xf32>
    %27 = tpu.matmul %26, %24, %cst_34 {dimension_numbers = #tpu.dot_dimension_numbers<[1], [0], [0], [1], [0, 0, 1, 1], [], []>} : vector<8x4xf32>, vector<4x80xf32>, vector<8x80xf32> -> vector<8x80xf32>
    %28 = arith.addf %22, %27 : vector<8x80xf32>
    %c0_35 = arith.constant 0 : index
    %c0_36 = arith.constant 0 : index
    %c0_37 = arith.constant 0 : index
    %c0_38 = arith.constant 0 : index
    %c12_39 = arith.constant 12 : index
    %29 = vector.load %arg3[%c0_35, %c0_36, %c0_37, %c0_38, %c12_39] : memref<1x4x1x1x110xf32, #tpu.memory_space<vmem>>, vector<1x4x1x1x80xf32>
    %30 = vector.shape_cast %29 : vector<1x4x1x1x80xf32> to vector<4x80xf32>
    %c0_40 = arith.constant 0 : index
    %c0_41 = arith.constant 0 : index
    %c20 = arith.constant 20 : index
    %31 = vector.load %arg4[%c0_40, %c0_41, %c20] : memref<1x8x36xf32, #tpu.memory_space<vmem>>, vector<1x8x4xf32>
    %32 = vector.shape_cast %31 : vector<1x8x4xf32> to vector<8x4xf32>
    %cst_42 = arith.constant dense<0.000000e+00> : vector<8x80xf32>
    %33 = tpu.matmul %32, %30, %cst_42 {dimension_numbers = #tpu.dot_dimension_numbers<[1], [0], [0], [1], [0, 0, 1, 1], [], []>} : vector<8x4xf32>, vector<4x80xf32>, vector<8x80xf32> -> vector<8x80xf32>
    %34 = arith.addf %28, %33 : vector<8x80xf32>
    %c0_43 = arith.constant 0 : index
    %c0_44 = arith.constant 0 : index
    %c0_45 = arith.constant 0 : index
    %c0_46 = arith.constant 0 : index
    %c20_47 = arith.constant 20 : index
    %35 = vector.load %arg3[%c0_43, %c0_44, %c0_45, %c0_46, %c20_47] : memref<1x4x1x1x110xf32, #tpu.memory_space<vmem>>, vector<1x4x1x1x80xf32>
    %36 = vector.shape_cast %35 : vector<1x4x1x1x80xf32> to vector<4x80xf32>
    %c0_48 = arith.constant 0 : index
    %c0_49 = arith.constant 0 : index
    %c24 = arith.constant 24 : index
    %37 = vector.load %arg4[%c0_48, %c0_49, %c24] : memref<1x8x36xf32, #tpu.memory_space<vmem>>, vector<1x8x4xf32>
    %38 = vector.shape_cast %37 : vector<1x8x4xf32> to vector<8x4xf32>
    %cst_50 = arith.constant dense<0.000000e+00> : vector<8x80xf32>
    %39 = tpu.matmul %38, %36, %cst_50 {dimension_numbers = #tpu.dot_dimension_numbers<[1], [0], [0], [1], [0, 0, 1, 1], [], []>} : vector<8x4xf32>, vector<4x80xf32>, vector<8x80xf32> -> vector<8x80xf32>
    %40 = arith.addf %34, %39 : vector<8x80xf32>
    %c0_51 = arith.constant 0 : index
    %c0_52 = arith.constant 0 : index
    %c0_53 = arith.constant 0 : index
    %c0_54 = arith.constant 0 : index
    %c21 = arith.constant 21 : index
    %41 = vector.load %arg3[%c0_51, %c0_52, %c0_53, %c0_54, %c21] : memref<1x4x1x1x110xf32, #tpu.memory_space<vmem>>, vector<1x4x1x1x80xf32>
    %42 = vector.shape_cast %41 : vector<1x4x1x1x80xf32> to vector<4x80xf32>
    %c0_55 = arith.constant 0 : index
    %c0_56 = arith.constant 0 : index
    %c28 = arith.constant 28 : index
    %43 = vector.load %arg4[%c0_55, %c0_56, %c28] : memref<1x8x36xf32, #tpu.memory_space<vmem>>, vector<1x8x4xf32>
    %44 = vector.shape_cast %43 : vector<1x8x4xf32> to vector<8x4xf32>
    %cst_57 = arith.constant dense<0.000000e+00> : vector<8x80xf32>
    %45 = tpu.matmul %44, %42, %cst_57 {dimension_numbers = #tpu.dot_dimension_numbers<[1], [0], [0], [1], [0, 0, 1, 1], [], []>} : vector<8x4xf32>, vector<4x80xf32>, vector<8x80xf32> -> vector<8x80xf32>
    %46 = arith.addf %40, %45 : vector<8x80xf32>
    %c0_58 = arith.constant 0 : index
    %c0_59 = arith.constant 0 : index
    %c0_60 = arith.constant 0 : index
    %c0_61 = arith.constant 0 : index
    %c22 = arith.constant 22 : index
    %47 = vector.load %arg3[%c0_58, %c0_59, %c0_60, %c0_61, %c22] : memref<1x4x1x1x110xf32, #tpu.memory_space<vmem>>, vector<1x4x1x1x80xf32>
    %48 = vector.shape_cast %47 : vector<1x4x1x1x80xf32> to vector<4x80xf32>
    %c0_62 = arith.constant 0 : index
    %c0_63 = arith.constant 0 : index
    %c32 = arith.constant 32 : index
    %49 = vector.load %arg4[%c0_62, %c0_63, %c32] : memref<1x8x36xf32, #tpu.memory_space<vmem>>, vector<1x8x4xf32>
    %50 = vector.shape_cast %49 : vector<1x8x4xf32> to vector<8x4xf32>
    %cst_64 = arith.constant dense<0.000000e+00> : vector<8x80xf32>
    %51 = tpu.matmul %50, %48, %cst_64 {dimension_numbers = #tpu.dot_dimension_numbers<[1], [0], [0], [1], [0, 0, 1, 1], [], []>} : vector<8x4xf32>, vector<4x80xf32>, vector<8x80xf32> -> vector<8x80xf32>
    %52 = arith.addf %46, %51 : vector<8x80xf32>
    %c0_i32 = arith.constant 0 : i32
    %53 = arith.cmpi eq, %arg2, %c0_i32 : i32
    %54 = arith.extui %53 : i1 to i32
    %c0_i32_65 = arith.constant 0 : i32
    %55 = arith.cmpi ne, %54, %c0_i32_65 : i32
    scf.if %55 {
      %cst_77 = arith.constant 0.000000e+00 : f32
      %65 = vector.broadcast %cst_77 : f32 to vector<8x80xf32>
      %c0_78 = arith.constant 0 : index
      %c0_79 = arith.constant 0 : index
      %c0_80 = arith.constant 0 : index
      %c0_81 = arith.constant 0 : index
      %c0_82 = arith.constant 0 : index
      %66 = vector.load %arg6[%c0_78, %c0_79, %c0_80, %c0_81, %c0_82] : memref<1x8x1x1x80xf32, #tpu.memory_space<vmem>>, vector<1x8x1x1x80xf32>
      %67 = vector.shape_cast %66 : vector<1x8x1x1x80xf32> to vector<8x80xf32>
      %68 = vector.shape_cast %65 : vector<8x80xf32> to vector<1x8x1x1x80xf32>
      tpu.vector_store %arg6[%c0_78, %c0_79, %c0_80, %c0_81, %c0_82], %68 {strides = array<i32>} : memref<1x8x1x1x80xf32, #tpu.memory_space<vmem>>, vector<1x8x1x1x80xf32>,
    } else {
    }
    %c0_66 = arith.constant 0 : index
    %c0_67 = arith.constant 0 : index
    %c0_68 = arith.constant 0 : index
    %c0_69 = arith.constant 0 : index
    %c0_70 = arith.constant 0 : index
    %56 = vector.load %arg6[%c0_66, %c0_67, %c0_68, %c0_69, %c0_70] : memref<1x8x1x1x80xf32, #tpu.memory_space<vmem>>, vector<1x8x1x1x80xf32>
    %57 = vector.shape_cast %56 : vector<1x8x1x1x80xf32> to vector<8x80xf32>
    %58 = arith.addf %57, %52 : vector<8x80xf32>
    %c0_71 = arith.constant 0 : index
    %c0_72 = arith.constant 0 : index
    %c0_73 = arith.constant 0 : index
    %c0_74 = arith.constant 0 : index
    %c0_75 = arith.constant 0 : index
    %59 = vector.load %arg6[%c0_71, %c0_72, %c0_73, %c0_74, %c0_75] : memref<1x8x1x1x80xf32, #tpu.memory_space<vmem>>, vector<1x8x1x1x80xf32>
    %60 = vector.shape_cast %59 : vector<1x8x1x1x80xf32> to vector<8x80xf32>
    %61 = vector.shape_cast %58 : vector<8x80xf32> to vector<1x8x1x1x80xf32>
    tpu.vector_store %arg6[%c0_71, %c0_72, %c0_73, %c0_74, %c0_75], %61 {strides = array<i32>} : memref<1x8x1x1x80xf32, #tpu.memory_space<vmem>>, vector<1x8x1x1x80xf32>,
    %c2_i32 = arith.constant 2 : i32
    %62 = arith.cmpi eq, %arg2, %c2_i32 : i32
    %63 = arith.extui %62 : i1 to i32
    %c0_i32_76 = arith.constant 0 : i32
    %64 = arith.cmpi ne, %63, %c0_i32_76 : i32
    scf.if %64 {
      %c0_77 = arith.constant 0 : index
      %c0_78 = arith.constant 0 : index
      %c0_79 = arith.constant 0 : index
      %c0_80 = arith.constant 0 : index
      %c0_81 = arith.constant 0 : index
      %65 = vector.load %arg6[%c0_77, %c0_78, %c0_79, %c0_80, %c0_81] : memref<1x8x1x1x80xf32, #tpu.memory_space<vmem>>, vector<1x8x1x1x80xf32>
      %66 = vector.shape_cast %65 : vector<1x8x1x1x80xf32> to vector<8x80xf32>
      %c0_82 = arith.constant 0 : index
      %c0_83 = arith.constant 0 : index
      %67 = vector.load %arg5[%c0_82, %c0_83] : memref<1x80xf32, #tpu.memory_space<vmem>>, vector<1x80xf32>
      %68 = vector.broadcast %67 : vector<1x80xf32> to vector<8x80xf32>
      %69 = arith.mulf %66, %68 : vector<8x80xf32>
      %cst_84 = arith.constant dense<0.000000e+00> : vector<8xf32>
      %70 = vector.multi_reduction <add>, %69, %cst_84 [1] : vector<8x80xf32> to vector<8xf32>
      %71 = vector.shape_cast %70 : vector<8xf32> to vector<8x1xf32>
      %c0_85 = arith.constant 0 : index
      %c0_86 = arith.constant 0 : index
      %c0_87 = arith.constant 0 : index
      %c0_88 = arith.constant 0 : index
      %72 = vector.load %arg7[%c0_85, %c0_86, %c0_87, %c0_88] : memref<1x1x8x2xf32, #tpu.memory_space<vmem>>, vector<1x1x8x1xf32>
      %73 = vector.shape_cast %72 : vector<1x1x8x1xf32> to vector<8x1xf32>
      %74 = vector.shape_cast %71 : vector<8x1xf32> to vector<1x1x8x1xf32>
      tpu.vector_store %arg7[%c0_85, %c0_86, %c0_87, %c0_88], %74 {strides = array<i32>} : memref<1x1x8x2xf32, #tpu.memory_space<vmem>>, vector<1x1x8x1xf32>,
      %75 = arith.mulf %69, %69 : vector<8x80xf32>
      %cst_89 = arith.constant dense<0.000000e+00> : vector<8xf32>
      %76 = vector.multi_reduction <add>, %75, %cst_89 [1] : vector<8x80xf32> to vector<8xf32>
      %77 = vector.shape_cast %76 : vector<8xf32> to vector<8x1xf32>
      %c0_90 = arith.constant 0 : index
      %c0_91 = arith.constant 0 : index
      %c0_92 = arith.constant 0 : index
      %c1_93 = arith.constant 1 : index
      %78 = vector.load %arg7[%c0_90, %c0_91, %c0_92, %c1_93] : memref<1x1x8x2xf32, #tpu.memory_space<vmem>>, vector<1x1x8x1xf32>
      %79 = vector.shape_cast %78 : vector<1x1x8x1xf32> to vector<8x1xf32>
      %80 = vector.shape_cast %77 : vector<8x1xf32> to vector<1x1x8x1xf32>
      tpu.vector_store %arg7[%c0_90, %c0_91, %c0_92, %c1_93], %80 {strides = array<i32>} : memref<1x1x8x2xf32, #tpu.memory_space<vmem>>, vector<1x1x8x1xf32>,
    } else {
    }
    return
  }
  func.func @transform_0(%arg0: i32, %arg1: i32, %arg2: i32) -> (i32, i32, i32, i32, i32) {
    %0 = arith.addi %arg1, %arg2 : i32
    %c0_i32 = arith.constant 0 : i32
    %c0_i32_0 = arith.constant 0 : i32
    %c0_i32_1 = arith.constant 0 : i32
    %c0_i32_2 = arith.constant 0 : i32
    return %arg0, %c0_i32, %0, %c0_i32_0, %c0_i32_1 : i32, i32, i32, i32, i32
  }
  func.func @transform_1(%arg0: i32, %arg1: i32, %arg2: i32) -> (i32, i32, i32) {
    %c0_i32 = arith.constant 0 : i32
    %c0_i32_0 = arith.constant 0 : i32
    %c0_i32_1 = arith.constant 0 : i32
    return %arg2, %c0_i32, %c0_i32_0 : i32, i32, i32
  }
  func.func @transform_2(%arg0: i32, %arg1: i32, %arg2: i32) -> (i32, i32) {
    %c0_i32 = arith.constant 0 : i32
    %c0_i32_0 = arith.constant 0 : i32
    %c0_i32_1 = arith.constant 0 : i32
    return %c0_i32, %c0_i32_0 : i32, i32
  }
  func.func @transform_3(%arg0: i32, %arg1: i32, %arg2: i32) -> (i32, i32, i32, i32, i32) {
    %c0_i32 = arith.constant 0 : i32
    %c0_i32_0 = arith.constant 0 : i32
    %c0_i32_1 = arith.constant 0 : i32
    %c0_i32_2 = arith.constant 0 : i32
    return %arg0, %c0_i32, %arg1, %c0_i32_0, %c0_i32_1 : i32, i32, i32, i32, i32
  }
  func.func @transform_4(%arg0: i32, %arg1: i32, %arg2: i32) -> (i32, i32, i32, i32) {
    %c0_i32 = arith.constant 0 : i32
    %c0_i32_0 = arith.constant 0 : i32
    %c0_i32_1 = arith.constant 0 : i32
    return %arg0, %arg1, %c0_i32, %c0_i32_0 : i32, i32, i32, i32
  }
}

module attributes {stable_mosaic.version = 11 : i64} {
  func.func @_bn_lrelu_kernel(%arg0: i32, %arg1: i32, %arg2: memref<1x8x1x1x80xf32, #tpu.memory_space<vmem>>, %arg3: memref<8x1xf32, #tpu.memory_space<vmem>>, %arg4: memref<8x1xf32, #tpu.memory_space<vmem>>, %arg5: memref<1x8x1x1x80xf32, #tpu.memory_space<vmem>>) attributes {dimension_semantics = [#tpu.dimension_semantics<parallel>, #tpu.dimension_semantics<parallel>], iteration_bounds = array<i64: 2, 8>, scalar_prefetch = 0 : i64, scratch_operands = 0 : i64, tpu.core_type = #tpu.core_type<tc>, window_params = [{transform_indices = @transform_0, window_bounds = array<i64: 1, 8, 1, 1, 80>}, {pipeline_mode = #tpu.pipeline_mode<synchronous>, transform_indices = @transform_1, window_bounds = array<i64: 8, 1>}, {pipeline_mode = #tpu.pipeline_mode<synchronous>, transform_indices = @transform_2, window_bounds = array<i64: 8, 1>}, {transform_indices = @transform_3, window_bounds = array<i64: 1, 8, 1, 1, 80>}]} {
    %c0 = arith.constant 0 : index
    %c0_0 = arith.constant 0 : index
    %c0_1 = arith.constant 0 : index
    %c0_2 = arith.constant 0 : index
    %c0_3 = arith.constant 0 : index
    %0 = vector.load %arg2[%c0, %c0_0, %c0_1, %c0_2, %c0_3] : memref<1x8x1x1x80xf32, #tpu.memory_space<vmem>>, vector<1x8x1x1x80xf32>
    %1 = vector.shape_cast %0 : vector<1x8x1x1x80xf32> to vector<8x80xf32>
    %c0_4 = arith.constant 0 : index
    %c0_5 = arith.constant 0 : index
    %2 = vector.load %arg3[%c0_4, %c0_5] : memref<8x1xf32, #tpu.memory_space<vmem>>, vector<8x1xf32>
    %3 = vector.broadcast %2 : vector<8x1xf32> to vector<8x80xf32>
    %4 = arith.mulf %1, %3 : vector<8x80xf32>
    %c0_6 = arith.constant 0 : index
    %c0_7 = arith.constant 0 : index
    %5 = vector.load %arg4[%c0_6, %c0_7] : memref<8x1xf32, #tpu.memory_space<vmem>>, vector<8x1xf32>
    %6 = vector.broadcast %5 : vector<8x1xf32> to vector<8x80xf32>
    %7 = arith.addf %4, %6 : vector<8x80xf32>
    %cst = arith.constant 0.000000e+00 : f32
    %8 = vector.broadcast %cst : f32 to vector<8x80xf32>
    %9 = arith.cmpf oge, %7, %8 : vector<8x80xf32>
    %cst_8 = arith.constant 1.000000e-01 : f32
    %10 = vector.broadcast %cst_8 : f32 to vector<8x80xf32>
    %11 = arith.mulf %10, %7 : vector<8x80xf32>
    %12 = arith.select %9, %7, %11 : vector<8x80xi1>, vector<8x80xf32>
    %c0_9 = arith.constant 0 : index
    %c0_10 = arith.constant 0 : index
    %c0_11 = arith.constant 0 : index
    %c0_12 = arith.constant 0 : index
    %c0_13 = arith.constant 0 : index
    %13 = vector.load %arg5[%c0_9, %c0_10, %c0_11, %c0_12, %c0_13] : memref<1x8x1x1x80xf32, #tpu.memory_space<vmem>>, vector<1x8x1x1x80xf32>
    %14 = vector.shape_cast %13 : vector<1x8x1x1x80xf32> to vector<8x80xf32>
    %15 = vector.shape_cast %12 : vector<8x80xf32> to vector<1x8x1x1x80xf32>
    tpu.vector_store %arg5[%c0_9, %c0_10, %c0_11, %c0_12, %c0_13], %15 {strides = array<i32>} : memref<1x8x1x1x80xf32, #tpu.memory_space<vmem>>, vector<1x8x1x1x80xf32>,
    return
  }
  func.func @transform_0(%arg0: i32, %arg1: i32) -> (i32, i32, i32, i32, i32) {
    %c0_i32 = arith.constant 0 : i32
    %c0_i32_0 = arith.constant 0 : i32
    %c0_i32_1 = arith.constant 0 : i32
    %c0_i32_2 = arith.constant 0 : i32
    return %arg0, %c0_i32, %arg1, %c0_i32_0, %c0_i32_1 : i32, i32, i32, i32, i32
  }
  func.func @transform_1(%arg0: i32, %arg1: i32) -> (i32, i32) {
    %c0_i32 = arith.constant 0 : i32
    %c0_i32_0 = arith.constant 0 : i32
    %c0_i32_1 = arith.constant 0 : i32
    return %c0_i32, %c0_i32_0 : i32, i32
  }
  func.func @transform_2(%arg0: i32, %arg1: i32) -> (i32, i32) {
    %c0_i32 = arith.constant 0 : i32
    %c0_i32_0 = arith.constant 0 : i32
    %c0_i32_1 = arith.constant 0 : i32
    return %c0_i32, %c0_i32_0 : i32, i32
  }
  func.func @transform_3(%arg0: i32, %arg1: i32) -> (i32, i32, i32, i32, i32) {
    %c0_i32 = arith.constant 0 : i32
    %c0_i32_0 = arith.constant 0 : i32
    %c0_i32_1 = arith.constant 0 : i32
    %c0_i32_2 = arith.constant 0 : i32
    return %arg0, %c0_i32, %arg1, %c0_i32_0, %c0_i32_1 : i32, i32, i32, i32, i32
  }
}

module attributes {stable_mosaic.version = 11 : i64} {
  func.func @_conv3d_tap_kernel(%arg0: i32, %arg1: i32, %arg2: i32, %arg3: memref<1x8x1x1x110xf32, #tpu.memory_space<vmem>>, %arg4: memref<1x8x72xf32, #tpu.memory_space<vmem>>, %arg5: memref<1x80xf32, #tpu.memory_space<vmem>>, %arg6: memref<1x8x1x1x80xf32, #tpu.memory_space<vmem>>, %arg7: memref<1x1x8x2xf32, #tpu.memory_space<vmem>>) attributes {dimension_semantics = [#tpu.dimension_semantics<parallel>, #tpu.dimension_semantics<parallel>, #tpu.dimension_semantics<arbitrary>], iteration_bounds = array<i64: 2, 8, 3>, scalar_prefetch = 0 : i64, scratch_operands = 0 : i64, tpu.core_type = #tpu.core_type<tc>, window_params = [{transform_indices = @transform_0, window_bounds = array<i64: 1, 8, 1, 1, 110>}, {transform_indices = @transform_1, window_bounds = array<i64: 1, 8, 72>}, {pipeline_mode = #tpu.pipeline_mode<synchronous>, transform_indices = @transform_2, window_bounds = array<i64: 1, 80>}, {transform_indices = @transform_3, window_bounds = array<i64: 1, 8, 1, 1, 80>}, {transform_indices = @transform_4, window_bounds = array<i64: 1, 1, 8, 2>}]} {
    %c0 = arith.constant 0 : index
    %c0_0 = arith.constant 0 : index
    %c0_1 = arith.constant 0 : index
    %c0_2 = arith.constant 0 : index
    %c0_3 = arith.constant 0 : index
    %0 = vector.load %arg3[%c0, %c0_0, %c0_1, %c0_2, %c0_3] : memref<1x8x1x1x110xf32, #tpu.memory_space<vmem>>, vector<1x8x1x1x80xf32>
    %1 = vector.shape_cast %0 : vector<1x8x1x1x80xf32> to vector<8x80xf32>
    %c0_4 = arith.constant 0 : index
    %c0_5 = arith.constant 0 : index
    %c0_6 = arith.constant 0 : index
    %2 = vector.load %arg4[%c0_4, %c0_5, %c0_6] : memref<1x8x72xf32, #tpu.memory_space<vmem>>, vector<1x8x8xf32>
    %3 = vector.shape_cast %2 : vector<1x8x8xf32> to vector<8x8xf32>
    %cst = arith.constant dense<0.000000e+00> : vector<8x80xf32>
    %4 = tpu.matmul %3, %1, %cst {dimension_numbers = #tpu.dot_dimension_numbers<[1], [0], [0], [1], [0, 0, 1, 1], [], []>} : vector<8x8xf32>, vector<8x80xf32>, vector<8x80xf32> -> vector<8x80xf32>
    %c0_7 = arith.constant 0 : index
    %c0_8 = arith.constant 0 : index
    %c0_9 = arith.constant 0 : index
    %c0_10 = arith.constant 0 : index
    %c1 = arith.constant 1 : index
    %5 = vector.load %arg3[%c0_7, %c0_8, %c0_9, %c0_10, %c1] : memref<1x8x1x1x110xf32, #tpu.memory_space<vmem>>, vector<1x8x1x1x80xf32>
    %6 = vector.shape_cast %5 : vector<1x8x1x1x80xf32> to vector<8x80xf32>
    %c0_11 = arith.constant 0 : index
    %c0_12 = arith.constant 0 : index
    %c8 = arith.constant 8 : index
    %7 = vector.load %arg4[%c0_11, %c0_12, %c8] : memref<1x8x72xf32, #tpu.memory_space<vmem>>, vector<1x8x8xf32>
    %8 = vector.shape_cast %7 : vector<1x8x8xf32> to vector<8x8xf32>
    %cst_13 = arith.constant dense<0.000000e+00> : vector<8x80xf32>
    %9 = tpu.matmul %8, %6, %cst_13 {dimension_numbers = #tpu.dot_dimension_numbers<[1], [0], [0], [1], [0, 0, 1, 1], [], []>} : vector<8x8xf32>, vector<8x80xf32>, vector<8x80xf32> -> vector<8x80xf32>
    %10 = arith.addf %4, %9 : vector<8x80xf32>
    %c0_14 = arith.constant 0 : index
    %c0_15 = arith.constant 0 : index
    %c0_16 = arith.constant 0 : index
    %c0_17 = arith.constant 0 : index
    %c2 = arith.constant 2 : index
    %11 = vector.load %arg3[%c0_14, %c0_15, %c0_16, %c0_17, %c2] : memref<1x8x1x1x110xf32, #tpu.memory_space<vmem>>, vector<1x8x1x1x80xf32>
    %12 = vector.shape_cast %11 : vector<1x8x1x1x80xf32> to vector<8x80xf32>
    %c0_18 = arith.constant 0 : index
    %c0_19 = arith.constant 0 : index
    %c16 = arith.constant 16 : index
    %13 = vector.load %arg4[%c0_18, %c0_19, %c16] : memref<1x8x72xf32, #tpu.memory_space<vmem>>, vector<1x8x8xf32>
    %14 = vector.shape_cast %13 : vector<1x8x8xf32> to vector<8x8xf32>
    %cst_20 = arith.constant dense<0.000000e+00> : vector<8x80xf32>
    %15 = tpu.matmul %14, %12, %cst_20 {dimension_numbers = #tpu.dot_dimension_numbers<[1], [0], [0], [1], [0, 0, 1, 1], [], []>} : vector<8x8xf32>, vector<8x80xf32>, vector<8x80xf32> -> vector<8x80xf32>
    %16 = arith.addf %10, %15 : vector<8x80xf32>
    %c0_21 = arith.constant 0 : index
    %c0_22 = arith.constant 0 : index
    %c0_23 = arith.constant 0 : index
    %c0_24 = arith.constant 0 : index
    %c10 = arith.constant 10 : index
    %17 = vector.load %arg3[%c0_21, %c0_22, %c0_23, %c0_24, %c10] : memref<1x8x1x1x110xf32, #tpu.memory_space<vmem>>, vector<1x8x1x1x80xf32>
    %18 = vector.shape_cast %17 : vector<1x8x1x1x80xf32> to vector<8x80xf32>
    %c0_25 = arith.constant 0 : index
    %c0_26 = arith.constant 0 : index
    %c24 = arith.constant 24 : index
    %19 = vector.load %arg4[%c0_25, %c0_26, %c24] : memref<1x8x72xf32, #tpu.memory_space<vmem>>, vector<1x8x8xf32>
    %20 = vector.shape_cast %19 : vector<1x8x8xf32> to vector<8x8xf32>
    %cst_27 = arith.constant dense<0.000000e+00> : vector<8x80xf32>
    %21 = tpu.matmul %20, %18, %cst_27 {dimension_numbers = #tpu.dot_dimension_numbers<[1], [0], [0], [1], [0, 0, 1, 1], [], []>} : vector<8x8xf32>, vector<8x80xf32>, vector<8x80xf32> -> vector<8x80xf32>
    %22 = arith.addf %16, %21 : vector<8x80xf32>
    %c0_28 = arith.constant 0 : index
    %c0_29 = arith.constant 0 : index
    %c0_30 = arith.constant 0 : index
    %c0_31 = arith.constant 0 : index
    %c11 = arith.constant 11 : index
    %23 = vector.load %arg3[%c0_28, %c0_29, %c0_30, %c0_31, %c11] : memref<1x8x1x1x110xf32, #tpu.memory_space<vmem>>, vector<1x8x1x1x80xf32>
    %24 = vector.shape_cast %23 : vector<1x8x1x1x80xf32> to vector<8x80xf32>
    %c0_32 = arith.constant 0 : index
    %c0_33 = arith.constant 0 : index
    %c32 = arith.constant 32 : index
    %25 = vector.load %arg4[%c0_32, %c0_33, %c32] : memref<1x8x72xf32, #tpu.memory_space<vmem>>, vector<1x8x8xf32>
    %26 = vector.shape_cast %25 : vector<1x8x8xf32> to vector<8x8xf32>
    %cst_34 = arith.constant dense<0.000000e+00> : vector<8x80xf32>
    %27 = tpu.matmul %26, %24, %cst_34 {dimension_numbers = #tpu.dot_dimension_numbers<[1], [0], [0], [1], [0, 0, 1, 1], [], []>} : vector<8x8xf32>, vector<8x80xf32>, vector<8x80xf32> -> vector<8x80xf32>
    %28 = arith.addf %22, %27 : vector<8x80xf32>
    %c0_35 = arith.constant 0 : index
    %c0_36 = arith.constant 0 : index
    %c0_37 = arith.constant 0 : index
    %c0_38 = arith.constant 0 : index
    %c12 = arith.constant 12 : index
    %29 = vector.load %arg3[%c0_35, %c0_36, %c0_37, %c0_38, %c12] : memref<1x8x1x1x110xf32, #tpu.memory_space<vmem>>, vector<1x8x1x1x80xf32>
    %30 = vector.shape_cast %29 : vector<1x8x1x1x80xf32> to vector<8x80xf32>
    %c0_39 = arith.constant 0 : index
    %c0_40 = arith.constant 0 : index
    %c40 = arith.constant 40 : index
    %31 = vector.load %arg4[%c0_39, %c0_40, %c40] : memref<1x8x72xf32, #tpu.memory_space<vmem>>, vector<1x8x8xf32>
    %32 = vector.shape_cast %31 : vector<1x8x8xf32> to vector<8x8xf32>
    %cst_41 = arith.constant dense<0.000000e+00> : vector<8x80xf32>
    %33 = tpu.matmul %32, %30, %cst_41 {dimension_numbers = #tpu.dot_dimension_numbers<[1], [0], [0], [1], [0, 0, 1, 1], [], []>} : vector<8x8xf32>, vector<8x80xf32>, vector<8x80xf32> -> vector<8x80xf32>
    %34 = arith.addf %28, %33 : vector<8x80xf32>
    %c0_42 = arith.constant 0 : index
    %c0_43 = arith.constant 0 : index
    %c0_44 = arith.constant 0 : index
    %c0_45 = arith.constant 0 : index
    %c20 = arith.constant 20 : index
    %35 = vector.load %arg3[%c0_42, %c0_43, %c0_44, %c0_45, %c20] : memref<1x8x1x1x110xf32, #tpu.memory_space<vmem>>, vector<1x8x1x1x80xf32>
    %36 = vector.shape_cast %35 : vector<1x8x1x1x80xf32> to vector<8x80xf32>
    %c0_46 = arith.constant 0 : index
    %c0_47 = arith.constant 0 : index
    %c48 = arith.constant 48 : index
    %37 = vector.load %arg4[%c0_46, %c0_47, %c48] : memref<1x8x72xf32, #tpu.memory_space<vmem>>, vector<1x8x8xf32>
    %38 = vector.shape_cast %37 : vector<1x8x8xf32> to vector<8x8xf32>
    %cst_48 = arith.constant dense<0.000000e+00> : vector<8x80xf32>
    %39 = tpu.matmul %38, %36, %cst_48 {dimension_numbers = #tpu.dot_dimension_numbers<[1], [0], [0], [1], [0, 0, 1, 1], [], []>} : vector<8x8xf32>, vector<8x80xf32>, vector<8x80xf32> -> vector<8x80xf32>
    %40 = arith.addf %34, %39 : vector<8x80xf32>
    %c0_49 = arith.constant 0 : index
    %c0_50 = arith.constant 0 : index
    %c0_51 = arith.constant 0 : index
    %c0_52 = arith.constant 0 : index
    %c21 = arith.constant 21 : index
    %41 = vector.load %arg3[%c0_49, %c0_50, %c0_51, %c0_52, %c21] : memref<1x8x1x1x110xf32, #tpu.memory_space<vmem>>, vector<1x8x1x1x80xf32>
    %42 = vector.shape_cast %41 : vector<1x8x1x1x80xf32> to vector<8x80xf32>
    %c0_53 = arith.constant 0 : index
    %c0_54 = arith.constant 0 : index
    %c56 = arith.constant 56 : index
    %43 = vector.load %arg4[%c0_53, %c0_54, %c56] : memref<1x8x72xf32, #tpu.memory_space<vmem>>, vector<1x8x8xf32>
    %44 = vector.shape_cast %43 : vector<1x8x8xf32> to vector<8x8xf32>
    %cst_55 = arith.constant dense<0.000000e+00> : vector<8x80xf32>
    %45 = tpu.matmul %44, %42, %cst_55 {dimension_numbers = #tpu.dot_dimension_numbers<[1], [0], [0], [1], [0, 0, 1, 1], [], []>} : vector<8x8xf32>, vector<8x80xf32>, vector<8x80xf32> -> vector<8x80xf32>
    %46 = arith.addf %40, %45 : vector<8x80xf32>
    %c0_56 = arith.constant 0 : index
    %c0_57 = arith.constant 0 : index
    %c0_58 = arith.constant 0 : index
    %c0_59 = arith.constant 0 : index
    %c22 = arith.constant 22 : index
    %47 = vector.load %arg3[%c0_56, %c0_57, %c0_58, %c0_59, %c22] : memref<1x8x1x1x110xf32, #tpu.memory_space<vmem>>, vector<1x8x1x1x80xf32>
    %48 = vector.shape_cast %47 : vector<1x8x1x1x80xf32> to vector<8x80xf32>
    %c0_60 = arith.constant 0 : index
    %c0_61 = arith.constant 0 : index
    %c64 = arith.constant 64 : index
    %49 = vector.load %arg4[%c0_60, %c0_61, %c64] : memref<1x8x72xf32, #tpu.memory_space<vmem>>, vector<1x8x8xf32>
    %50 = vector.shape_cast %49 : vector<1x8x8xf32> to vector<8x8xf32>
    %cst_62 = arith.constant dense<0.000000e+00> : vector<8x80xf32>
    %51 = tpu.matmul %50, %48, %cst_62 {dimension_numbers = #tpu.dot_dimension_numbers<[1], [0], [0], [1], [0, 0, 1, 1], [], []>} : vector<8x8xf32>, vector<8x80xf32>, vector<8x80xf32> -> vector<8x80xf32>
    %52 = arith.addf %46, %51 : vector<8x80xf32>
    %c0_i32 = arith.constant 0 : i32
    %53 = arith.cmpi eq, %arg2, %c0_i32 : i32
    %54 = arith.extui %53 : i1 to i32
    %c0_i32_63 = arith.constant 0 : i32
    %55 = arith.cmpi ne, %54, %c0_i32_63 : i32
    scf.if %55 {
      %cst_75 = arith.constant 0.000000e+00 : f32
      %65 = vector.broadcast %cst_75 : f32 to vector<8x80xf32>
      %c0_76 = arith.constant 0 : index
      %c0_77 = arith.constant 0 : index
      %c0_78 = arith.constant 0 : index
      %c0_79 = arith.constant 0 : index
      %c0_80 = arith.constant 0 : index
      %66 = vector.load %arg6[%c0_76, %c0_77, %c0_78, %c0_79, %c0_80] : memref<1x8x1x1x80xf32, #tpu.memory_space<vmem>>, vector<1x8x1x1x80xf32>
      %67 = vector.shape_cast %66 : vector<1x8x1x1x80xf32> to vector<8x80xf32>
      %68 = vector.shape_cast %65 : vector<8x80xf32> to vector<1x8x1x1x80xf32>
      tpu.vector_store %arg6[%c0_76, %c0_77, %c0_78, %c0_79, %c0_80], %68 {strides = array<i32>} : memref<1x8x1x1x80xf32, #tpu.memory_space<vmem>>, vector<1x8x1x1x80xf32>,
    } else {
    }
    %c0_64 = arith.constant 0 : index
    %c0_65 = arith.constant 0 : index
    %c0_66 = arith.constant 0 : index
    %c0_67 = arith.constant 0 : index
    %c0_68 = arith.constant 0 : index
    %56 = vector.load %arg6[%c0_64, %c0_65, %c0_66, %c0_67, %c0_68] : memref<1x8x1x1x80xf32, #tpu.memory_space<vmem>>, vector<1x8x1x1x80xf32>
    %57 = vector.shape_cast %56 : vector<1x8x1x1x80xf32> to vector<8x80xf32>
    %58 = arith.addf %57, %52 : vector<8x80xf32>
    %c0_69 = arith.constant 0 : index
    %c0_70 = arith.constant 0 : index
    %c0_71 = arith.constant 0 : index
    %c0_72 = arith.constant 0 : index
    %c0_73 = arith.constant 0 : index
    %59 = vector.load %arg6[%c0_69, %c0_70, %c0_71, %c0_72, %c0_73] : memref<1x8x1x1x80xf32, #tpu.memory_space<vmem>>, vector<1x8x1x1x80xf32>
    %60 = vector.shape_cast %59 : vector<1x8x1x1x80xf32> to vector<8x80xf32>
    %61 = vector.shape_cast %58 : vector<8x80xf32> to vector<1x8x1x1x80xf32>
    tpu.vector_store %arg6[%c0_69, %c0_70, %c0_71, %c0_72, %c0_73], %61 {strides = array<i32>} : memref<1x8x1x1x80xf32, #tpu.memory_space<vmem>>, vector<1x8x1x1x80xf32>,
    %c2_i32 = arith.constant 2 : i32
    %62 = arith.cmpi eq, %arg2, %c2_i32 : i32
    %63 = arith.extui %62 : i1 to i32
    %c0_i32_74 = arith.constant 0 : i32
    %64 = arith.cmpi ne, %63, %c0_i32_74 : i32
    scf.if %64 {
      %c0_75 = arith.constant 0 : index
      %c0_76 = arith.constant 0 : index
      %c0_77 = arith.constant 0 : index
      %c0_78 = arith.constant 0 : index
      %c0_79 = arith.constant 0 : index
      %65 = vector.load %arg6[%c0_75, %c0_76, %c0_77, %c0_78, %c0_79] : memref<1x8x1x1x80xf32, #tpu.memory_space<vmem>>, vector<1x8x1x1x80xf32>
      %66 = vector.shape_cast %65 : vector<1x8x1x1x80xf32> to vector<8x80xf32>
      %c0_80 = arith.constant 0 : index
      %c0_81 = arith.constant 0 : index
      %67 = vector.load %arg5[%c0_80, %c0_81] : memref<1x80xf32, #tpu.memory_space<vmem>>, vector<1x80xf32>
      %68 = vector.broadcast %67 : vector<1x80xf32> to vector<8x80xf32>
      %69 = arith.mulf %66, %68 : vector<8x80xf32>
      %cst_82 = arith.constant dense<0.000000e+00> : vector<8xf32>
      %70 = vector.multi_reduction <add>, %69, %cst_82 [1] : vector<8x80xf32> to vector<8xf32>
      %71 = vector.shape_cast %70 : vector<8xf32> to vector<8x1xf32>
      %c0_83 = arith.constant 0 : index
      %c0_84 = arith.constant 0 : index
      %c0_85 = arith.constant 0 : index
      %c0_86 = arith.constant 0 : index
      %72 = vector.load %arg7[%c0_83, %c0_84, %c0_85, %c0_86] : memref<1x1x8x2xf32, #tpu.memory_space<vmem>>, vector<1x1x8x1xf32>
      %73 = vector.shape_cast %72 : vector<1x1x8x1xf32> to vector<8x1xf32>
      %74 = vector.shape_cast %71 : vector<8x1xf32> to vector<1x1x8x1xf32>
      tpu.vector_store %arg7[%c0_83, %c0_84, %c0_85, %c0_86], %74 {strides = array<i32>} : memref<1x1x8x2xf32, #tpu.memory_space<vmem>>, vector<1x1x8x1xf32>,
      %75 = arith.mulf %69, %69 : vector<8x80xf32>
      %cst_87 = arith.constant dense<0.000000e+00> : vector<8xf32>
      %76 = vector.multi_reduction <add>, %75, %cst_87 [1] : vector<8x80xf32> to vector<8xf32>
      %77 = vector.shape_cast %76 : vector<8xf32> to vector<8x1xf32>
      %c0_88 = arith.constant 0 : index
      %c0_89 = arith.constant 0 : index
      %c0_90 = arith.constant 0 : index
      %c1_91 = arith.constant 1 : index
      %78 = vector.load %arg7[%c0_88, %c0_89, %c0_90, %c1_91] : memref<1x1x8x2xf32, #tpu.memory_space<vmem>>, vector<1x1x8x1xf32>
      %79 = vector.shape_cast %78 : vector<1x1x8x1xf32> to vector<8x1xf32>
      %80 = vector.shape_cast %77 : vector<8x1xf32> to vector<1x1x8x1xf32>
      tpu.vector_store %arg7[%c0_88, %c0_89, %c0_90, %c1_91], %80 {strides = array<i32>} : memref<1x1x8x2xf32, #tpu.memory_space<vmem>>, vector<1x1x8x1xf32>,
    } else {
    }
    return
  }
  func.func @transform_0(%arg0: i32, %arg1: i32, %arg2: i32) -> (i32, i32, i32, i32, i32) {
    %0 = arith.addi %arg1, %arg2 : i32
    %c0_i32 = arith.constant 0 : i32
    %c0_i32_0 = arith.constant 0 : i32
    %c0_i32_1 = arith.constant 0 : i32
    %c0_i32_2 = arith.constant 0 : i32
    return %arg0, %c0_i32, %0, %c0_i32_0, %c0_i32_1 : i32, i32, i32, i32, i32
  }
  func.func @transform_1(%arg0: i32, %arg1: i32, %arg2: i32) -> (i32, i32, i32) {
    %c0_i32 = arith.constant 0 : i32
    %c0_i32_0 = arith.constant 0 : i32
    %c0_i32_1 = arith.constant 0 : i32
    return %arg2, %c0_i32, %c0_i32_0 : i32, i32, i32
  }
  func.func @transform_2(%arg0: i32, %arg1: i32, %arg2: i32) -> (i32, i32) {
    %c0_i32 = arith.constant 0 : i32
    %c0_i32_0 = arith.constant 0 : i32
    %c0_i32_1 = arith.constant 0 : i32
    return %c0_i32, %c0_i32_0 : i32, i32
  }
  func.func @transform_3(%arg0: i32, %arg1: i32, %arg2: i32) -> (i32, i32, i32, i32, i32) {
    %c0_i32 = arith.constant 0 : i32
    %c0_i32_0 = arith.constant 0 : i32
    %c0_i32_1 = arith.constant 0 : i32
    %c0_i32_2 = arith.constant 0 : i32
    return %arg0, %c0_i32, %arg1, %c0_i32_0, %c0_i32_1 : i32, i32, i32, i32, i32
  }
  func.func @transform_4(%arg0: i32, %arg1: i32, %arg2: i32) -> (i32, i32, i32, i32) {
    %c0_i32 = arith.constant 0 : i32
    %c0_i32_0 = arith.constant 0 : i32
    %c0_i32_1 = arith.constant 0 : i32
    return %arg0, %arg1, %c0_i32, %c0_i32_0 : i32, i32, i32, i32
  }
}

</mosaic_0001>

<bundles_post_ra>
// kernel: conv_block_3d.5
= control target key start
LH: loop header
LB: loop body
LE: loop exit
PB: predicated region body
PF: predicated region fallthrough
CT: control target
= control target key end

     0   :  { %s649_s12 = smov 0   ;;  %s651_s13 = smov 0   ;;  %s782_s0 = inlined_call_operand.vmem [shape: f32[2,8,8,1,80], index: 0, kind: input, shape index: {}]   ;;  %s783_s1 = inlined_call_operand.vmem [shape: f32[8,1], index: 1, kind: input, shape index: {}]   ;;  %s784_s2 = inlined_call_operand.vmem [shape: f32[8,1], index: 2, kind: input, shape index: {}]   ;;  %s785_s3 = inlined_call_operand.vmem [shape: f32[2,8,8,1,80], index: 3, kind: output, shape index: {}]  }
   0x1   :  { %s653_s14 = smov 0   ;;  %s655_s15 = smov 0  }
   0x2   :  { %s657_s16 = smov 0   ;;  %s659_s17 = smov 0  }
   0x3   :  { %s661_s18 = smov 0  }
   0x4 LB: > { %s22_s19 = sadd.s32 1, %s618_s16  ;;  %s25_s20 = sadd.s32 1, %s622_s17  ;;  %s626_s18 = sphi %s661_s18, %s13_s18   ;;  %s622_s17 = sphi %s659_s17, %s792_s17   ;;  %s618_s16 = sphi %s657_s16, %s791_s16   ;;  %s614_s15 = sphi %s655_s15, %s790_s15   ;;  %s610_s14 = sphi %s653_s14, %s789_s14   ;;  %s606_s13 = sphi %s651_s13, %s788_s13   ;;  %s602_s12 = sphi %s649_s12, %s787_s12  }
   0x5   : > { %p23_p0 = scmp.ge.s32.totalorder %s22_s19, 8  ;;  %s501_s21 = sadd.s32 4294967295, %s626_s18  }
   0x6   : > { %p41_p1 = scmp.ne.s32.totalorder %s606_s13, %s602_s12  ;;  %p42_p2 = scmp.eq.s32.totalorder %s626_s18, 0 }
   0x7   : > { %s794_s19 = smov (%p23_p0, %s22_s19), 0  ;;  %s796_s20 = smov (!%p23_p0, %s25_s20), %s622_s17 }
   0x8   : > { %p27_p3 = scmp.ge.s32.totalorder %s796_s20, 2  ;;  %p115_p4 = scmp.eq.s32.totalorder %s501_s21, 15 }
   0x9   : > { %s30_s22 = ssub.s32 %s618_s16, %s794_s19  ;;  %p43_p5 = por %p42_p2, %p41_p1 }
   0xa   : > { %s798_s20 = smov (%p27_p3, %s796_s20), 0  ;;  %p697_p6 = por %p115_p4, %p41_p1 }
   0xb   : > { %s29_s24 = ssub.s32 %s622_s17, %s798_s20  ;;  %s34_s26 = sadd.s32 1, %s606_s13 }
   0xc   : > { %s31_s25 = sor.u32 %s30_s22, %s29_s24  ;;  %p504_p8 = scmp.ge.s32.totalorder %s626_s18, 16 }
   0xd   : > { %p32_p7 = scmp.eq.s32.totalorder %s31_s25, 0 }
   0xe   : > { %143 = sbr.rel (%p504_p8) target bundleno = 32 (0x20), region = 24 }
   0xf   : > { %s705_s27 = scalar_select %p32_p7, %s606_s13, %s34_s26  }
  0x13   : > { %146 = sbr.rel (!%p43_p5) target bundleno = 32 (0x20), region = 28  ;;  %s148_s28 = sand.u32 (%p43_p5), 1, %s606_s13  }
  0x14   : > { %s506_s29 = sshll.u32 (%p43_p5), %s622_s17, 6  ;;  %s505_s30 = sshll.u32 (%p43_p5), %s148_s28, 3 }
  0x15   : > { %s152_s4 = sadd.s32 (%p43_p5), %s618_s16, %s506_s29  ;;  %s150_s8 = scalar_lea.vmem (%p43_p5), [#allocation2], %s505_s30 }
  0x16   : > { %s153_s7 = scalar_lea.vmem (%p43_p5), %s782_s0, %s152_s4 }
  0x17   : > { %v170_v0 = vld [vmem:[%s153_s7] sm:$0x1] (%p43_p5)  ;;  %v172_v1 = vld [vmem:[%s153_s7 + $0x8] sm:$0x1] (%p43_p5)  ;;  %v174_v2 = vld [vmem:[%s153_s7 + $0x10] sm:$0x1] (%p43_p5) }
  0x18   : > { %171 = vst [vmem:[%s150_s8] sm:$0x1] %v170_v0  ;;  %v176_v3 = vld [vmem:[%s153_s7 + $0x18] sm:$0x1]  ;;  %v178_v4 = vld [vmem:[%s153_s7 + $0x20] sm:$0x1] }
  0x19   : > { %173 = vst [vmem:[%s150_s8 + $0x1] sm:$0x1] %v172_v1  ;;  %v180_v5 = vld [vmem:[%s153_s7 + $0x28] sm:$0x1]  ;;  %v182_v6 = vld [vmem:[%s153_s7 + $0x30] sm:$0x1] }
  0x1a   : > { %175 = vst [vmem:[%s150_s8 + $0x2] sm:$0x1] %v174_v2  ;;  %v184_v7 = vld [vmem:[%s153_s7 + $0x38] sm:$0x1] }
  0x1b   : > { %177 = vst [vmem:[%s150_s8 + $0x3] sm:$0x1] %v176_v3 }
  0x1c   : > { %179 = vst [vmem:[%s150_s8 + $0x4] sm:$0x1] %v178_v4 }
  0x1d   : > { %181 = vst [vmem:[%s150_s8 + $0x5] sm:$0x1] %v180_v5 }
  0x1e   : > { %183 = vst [vmem:[%s150_s8 + $0x6] sm:$0x1] %v182_v6 }
  0x1f   : > { %185 = vst [vmem:[%s150_s8 + $0x7] sm:$0x1] %v184_v7 }
  0x20 PF: > { %p507_p9 = scmp.ge.s32.totalorder %s626_s18, 1  ;;  %p224_p10 = scmp.lt.s32.totalorder %s626_s18, 17 }
  0x22   : > { %p225_p11 = pnand %p507_p9, %p224_p10 }
  0x23   : > { %s231_s22 = sand.u32 (!%p225_p11), 1, %s602_s12  }
  0x24   : > { %228 = sbr.rel (%p225_p11) target bundleno = 190 (0xbe), region = 69  ;;  %s723_s24 = sshll.u32 (!%p225_p11), %s231_s22, 3 }
  0x25   : > { %s233_s25 = scalar_lea.vmem (!%p225_p11), [#allocation2], %s723_s24  ;;  %s727_s12 = scalar_lea.vmem (!%p225_p11), [#allocation3], %s723_s24 }
  0x29   : > { %v261_v8 = vld [vmem:[%s783_s1] sm:$0xff]  ;;  %v628_v9 = vmov 0   ;;  %vm343_vm0 = vcmask 647168   ;;  %s511_s26 = sshll.u32 (%p697_p6), %s614_s15, 6 }
  0x2a   : > { %571 = vset.pattern.permute.xlu0 %v628_v9  ;;  %v290_v10 = vld [vmem:[%s784_s2] sm:$0xff]  ;;  %s360_s28 = sadd.s32 (%p697_p6), %s610_s14, %s511_s26 }
  0x2b   : > { %264 = vperm.xlu0 %571, %v261_v8   ;;  %v253_v12 = vld [vmem:[%s233_s25] sm:$0x1]  ;;  %v254_v13 = vld [vmem:[%s233_s25 + $0x1] sm:$0x1]  ;;  %v255_v14 = vld [vmem:[%s233_s25 + $0x2] sm:$0x1]  ;;  %s361_s4 = scalar_lea.vmem (%p697_p6), %s785_s3, %s360_s28 }
  0x2c   : > { %v256_v19 = vld [vmem:[%s233_s25 + $0x3] sm:$0x1]  ;;  %v257_v24 = vld [vmem:[%s233_s25 + $0x4] sm:$0x1]  ;;  %v258_v25 = vld [vmem:[%s233_s25 + $0x5] sm:$0x1] }
  0x2d   : > { %v259_v26 = vld [vmem:[%s233_s25 + $0x6] sm:$0x1]  ;;  %v260_v27 = vld [vmem:[%s233_s25 + $0x7] sm:$0x1] }
  0x33   : > { %293 = vperm.xlu0 %571, %v290_v10  }
  0x9d   : > { %v265_v11 = vpop.permute.xlu0 %264 }
  0x9e   : > { %v266_v15 = vperm.slane %v265_v11, 0  ;;  %v267_v16 = vperm.slane %v265_v11, 1  ;;  %v268_v17 = vperm.slane %v265_v11, 2  ;;  %v269_v18 = vperm.slane %v265_v11, 3 }
  0x9f   : > { %v270_v20 = vperm.slane %v265_v11, 4  ;;  %v271_v21 = vperm.slane %v265_v11, 5  ;;  %v272_v22 = vperm.slane %v265_v11, 6  ;;  %v273_v23 = vperm.slane %v265_v11, 7 }
  0xa0   : > { %v282_v28 = vmul.f32 %v266_v15, %v253_v12  ;;  %v283_v29 = vmul.f32 %v267_v16, %v254_v13  ;;  %v284_v30 = vmul.f32 %v268_v17, %v255_v14  ;;  %v285_v31 = vmul.f32 %v269_v18, %v256_v19 }
  0xa1   : > { %v286_v33 = vmul.f32 %v270_v20, %v257_v24  ;;  %v287_v34 = vmul.f32 %v271_v21, %v258_v25  ;;  %v288_v35 = vmul.f32 %v272_v22, %v259_v26  ;;  %v289_v36 = vmul.f32 %v273_v23, %v260_v27 }
  0xa5   : > { %v294_v32 = vpop.permute.xlu0 %293 }
  0xa6   : > { %v295_v37 = vperm.slane %v294_v32, 0  ;;  %v296_v38 = vperm.slane %v294_v32, 1  ;;  %v297_v39 = vperm.slane %v294_v32, 2  ;;  %v298_v40 = vperm.slane %v294_v32, 3 }
  0xa7   : > { %v299_v41 = vperm.slane %v294_v32, 4  ;;  %v300_v42 = vperm.slane %v294_v32, 5  ;;  %v301_v43 = vperm.slane %v294_v32, 6  ;;  %v302_v44 = vperm.slane %v294_v32, 7 }
  0xa8   : > { %v311_v45 = vadd.f32 %v295_v37, %v282_v28  ;;  %v312_v46 = vadd.f32 %v296_v38, %v283_v29  ;;  %v313_v47 = vadd.f32 %v297_v39, %v284_v30  ;;  %v314_v48 = vadd.f32 %v298_v40, %v285_v31 }
  0xa9   : > { %v315_v49 = vadd.f32 %v299_v41, %v286_v33  ;;  %v316_v50 = vadd.f32 %v300_v42, %v287_v34  ;;  %v317_v51 = vadd.f32 %v301_v43, %v288_v35  ;;  %v318_v52 = vadd.f32 %v302_v44, %v289_v36 }
  0xaa   : > { %vm319_vm1 = vcmp.ge.f32.partialorder %v311_v45, 0.0  ;;  %vm320_vm2 = vcmp.ge.f32.partialorder %v312_v46, 0.0  ;;  %vm321_vm3 = vcmp.ge.f32.partialorder %v313_v47, 0.0  ;;  %vm322_vm4 = vcmp.ge.f32.partialorder %v314_v48, 0.0 }
  0xab   : > { %vm323_vm5 = vcmp.ge.f32.partialorder %v315_v49, 0.0  ;;  %v327_v53 = vmul.f32 0.1, %v311_v45  ;;  %v328_v54 = vmul.f32 0.1, %v312_v46  ;;  %vm324_vm6 = vcmp.ge.f32.partialorder %v316_v50, 0.0 }
  0xac   : > { %v329_v55 = vmul.f32 0.1, %v313_v47  ;;  %v330_v56 = vmul.f32 0.1, %v314_v48  ;;  %v331_v57 = vmul.f32 0.1, %v315_v49 }
  0xad   : > { %v332_v58 = vmul.f32 0.1, %v316_v50  ;;  %v333_v59 = vmul.f32 0.1, %v317_v51  ;;  %v335_v60 = vsel %vm319_vm1, %v311_v45, %v327_v53  ;;  %v336_v61 = vsel %vm320_vm2, %v312_v46, %v328_v54 }
  0xae   : > { %vm325_vm7 = vcmp.ge.f32.partialorder %v317_v51, 0.0  ;;  %v334_v62 = vmul.f32 0.1, %v318_v52  ;;  %v337_v63 = vsel %vm321_vm3, %v313_v47, %v329_v55  ;;  %v338_v0 = vsel %vm322_vm4, %v314_v48, %v330_v56  ;;  %344 = vst.msk [vmem:[%s727_s12] sm:$0x1] %vm343_vm0, %v335_v60 }
  0xaf   : > { %vm326_vm8 = vcmp.ge.f32.partialorder %v318_v52, 0.0  ;;  %v339_v1 = vsel %vm323_vm5, %v315_v49, %v331_v57  ;;  %345 = vst.msk [vmem:[%s727_s12 + $0x1] sm:$0x1] %vm343_vm0, %v336_v61  ;;  %v340_v2 = vsel %vm324_vm6, %v316_v50, %v332_v58  ;;  %v341_v3 = vsel %vm325_vm7, %v317_v51, %v333_v59 }
  0xb0   : > { %346 = vst.msk [vmem:[%s727_s12 + $0x2] sm:$0x1] %vm343_vm0, %v337_v63  ;;  %v342_v4 = vsel %vm326_vm8, %v318_v52, %v334_v62 }
  0xb1   : > { %347 = vst.msk [vmem:[%s727_s12 + $0x3] sm:$0x1] %vm343_vm0, %v338_v0  ;;  %358 = sbr.rel (!%p697_p6) target bundleno = 190 (0xbe), region = 77 }
  0xb2   : > { %348 = vst.msk [vmem:[%s727_s12 + $0x4] sm:$0x1] %vm343_vm0, %v339_v1 }
  0xb3   : > { %349 = vst.msk [vmem:[%s727_s12 + $0x5] sm:$0x1] %vm343_vm0, %v340_v2 }
  0xb4   : > { %350 = vst.msk [vmem:[%s727_s12 + $0x6] sm:$0x1] %vm343_vm0, %v341_v3 }
  0xb5   : > { %351 = vst.msk [vmem:[%s727_s12 + $0x7] sm:$0x1] %vm343_vm0, %v342_v4  ;;  %v378_v5 = vld [vmem:[%s727_s12] sm:$0x1] (%p697_p6) }
  0xb6   : > { %v380_v6 = vld [vmem:[%s727_s12 + $0x1] sm:$0x1]  ;;  %379 = vst [vmem:[%s361_s4] sm:$0x1] %v378_v5 }
  0xb7   : > { %v382_v7 = vld [vmem:[%s727_s12 + $0x2] sm:$0x1]  ;;  %381 = vst [vmem:[%s361_s4 + $0x8] sm:$0x1] %v380_v6 }
  0xb8   : > { %v384_v8 = vld [vmem:[%s727_s12 + $0x3] sm:$0x1]  ;;  %383 = vst [vmem:[%s361_s4 + $0x10] sm:$0x1] %v382_v7 }
  0xb9   : > { %v386_v9 = vld [vmem:[%s727_s12 + $0x4] sm:$0x1]  ;;  %385 = vst [vmem:[%s361_s4 + $0x18] sm:$0x1] %v384_v8 }
  0xba   : > { %v388_v10 = vld [vmem:[%s727_s12 + $0x5] sm:$0x1]  ;;  %387 = vst [vmem:[%s361_s4 + $0x20] sm:$0x1] %v386_v9 }
  0xbb   : > { %v390_v11 = vld [vmem:[%s727_s12 + $0x6] sm:$0x1]  ;;  %389 = vst [vmem:[%s361_s4 + $0x28] sm:$0x1] %v388_v10 }
  0xbc   : > { %v392_v12 = vld [vmem:[%s727_s12 + $0x7] sm:$0x1]  ;;  %391 = vst [vmem:[%s361_s4 + $0x30] sm:$0x1] %v390_v11 }
  0xbd   : > { %393 = vst [vmem:[%s361_s4 + $0x38] sm:$0x1] %v392_v12 }
  0xbe PF: > { %s13_s18 = sadd.s32 1, %s626_s18   ;;  %s787_s12 = smov %s606_s13 }
  0xbf   : > { %p10_p12 = scmp.ge.s32.totalorder %s13_s18, 18   ;;  %s788_s13 = smov %s705_s27 }
  0xc0   : > { %s789_s14 = smov %s618_s16  ;;  %s790_s15 = smov %s622_s17 }
  0xc1   : > { %s791_s16 = smov %s794_s19  ;;  %s792_s17 = smov %s798_s20 }
  0xc2   :  { %12 = sbr.rel (!%p10_p12) target bundleno = 4 (0x4), region = 149 }

// kernel: conv_block_3d.4
= control target key start
LH: loop header
LB: loop body
LE: loop exit
PB: predicated region body
PF: predicated region fallthrough
CT: control target
= control target key end

     0   :  { %s1357_s15 = smov 0   ;;  %s1359_s16 = smov 0   ;;  %s1649_s0 = inlined_call_operand.vmem [shape: f32[2,4,10,1,110], index: 0, kind: input, shape index: {}]   ;;  %s1650_s1 = inlined_call_operand.vmem [shape: f32[3,8,36], index: 1, kind: input, shape index: {}]   ;;  %s1651_s2 = inlined_call_operand.vmem [shape: f32[1,80], index: 2, kind: input, shape index: {}]   ;;  %s1652_s3 = inlined_call_operand.vmem [shape: f32[2,8,8,1,80], index: 3, kind: output, shape index: {0}]   ;;  %s1653_s4 = inlined_call_operand.vmem [shape: f32[2,8,8,2], index: 4, kind: output, shape index: {1}]  }
   0x1   :  { %s1361_s17 = smov 0   ;;  %s1363_s18 = smov 0  }
   0x2   :  { %s1365_s19 = smov 0   ;;  %s1367_s20 = smov 0  }
   0x3   :  { %s1369_s21 = smov 0   ;;  %s1371_s22 = smov 0  }
   0x4   :  { %s1373_s23 = smov 0   ;;  %s1375_s24 = smov 0  }
   0x5   :  { %s1377_s25 = smov 0  }
   0x6 LB: > { %1658 = sst [smem:[#allocation4_spill]] %s1303_s22  ;;  %s27_s26 = sadd.s32 1, %s1303_s22  ;;  %s1315_s25 = sphi %s1377_s25, %s15_s25   ;;  %s1311_s24 = sphi %s1375_s24, %s1676_s24   ;;  %s1307_s23 = sphi %s1373_s23, %s1675_s23   ;;  %s1303_s22 = sphi %s1371_s22, %s1674_s22   ;;  %s1299_s21 = sphi %s1369_s21, %s1673_s21   ;;  %s1295_s20 = sphi %s1367_s20, %s1672_s20   ;;  %s1291_s19 = sphi %s1365_s19, %s1664_s19   ;;  %s1287_s18 = sphi %s1363_s18, %s1671_s18   ;;  %s1283_s17 = sphi %s1361_s17, %s1670_s17   ;;  %s1279_s16 = sphi %s1359_s16, %s1669_s16   ;;  %s1275_s15 = sphi %s1357_s15, %s1668_s15  }
   0x7   : > { %p28_p0 = scmp.ge.s32.totalorder %s27_s26, 3  ;;  %s30_s27 = sadd.s32 1, %s1307_s23 }
   0x8   : > { %s1089_s28 = sadd.s32 4294967295, %s1315_s25   ;;  %s34_s29 = sadd.s32 1, %s1311_s24 }
   0x9   : > { %s1678_s26 = smov (%p28_p0, %s27_s26), 0  ;;  %s1680_s27 = smov (!%p28_p0, %s30_s27), %s1307_s23 }
   0xa   : > { %1659 = sst [smem:[#allocation5_spill]] %s1678_s26  ;;  %p52_p1 = scmp.ne.s32.totalorder %s1287_s18, %s1283_s17 }
   0xb   : > { %p32_p2 = scmp.ge.s32.totalorder %s1680_s27, 8  ;;  %p53_p3 = scmp.eq.s32.totalorder %s1315_s25, 0 }
   0xc   : > { %s38_s30 = sadd.s32 %s1303_s22, %s1307_s23  ;;  %p130_p4 = scmp.ne.s32.totalorder %s1279_s16, %s1275_s15 }
   0xd   : > { %s1682_s27 = smov (%p32_p2, %s1680_s27), 0  ;;  %s1684_s29 = smov (!%p32_p2, %s34_s29), %s1311_s24 }
   0xe   : > { %1660 = sst [smem:[#allocation6_spill]] %s1682_s27  ;;  %s39_s5 = sadd.s32 %s1682_s27, %s1678_s26 }
   0xf   : > { %p1431_p5 = por %p53_p3, %p52_p1  ;;  %p36_p6 = scmp.ge.s32.totalorder %s1684_s29, 2 }
  0x10   : > { %s41_s7 = ssub.s32 %s38_s30, %s39_s5  ;;  %s116_s8 = ssub.s32 %s1307_s23, %s1682_s27 }
  0x11   : > { %p131_p7 = scmp.eq.s32.totalorder %s1089_s28, 47  ;;  %s1686_s29 = smov (%p36_p6, %s1684_s29), 0 }
  0x12   : > { %1662 = sst [smem:[#allocation7_spill]] %s1686_s29  ;;  %s45_s9 = sadd.s32 1, %s1287_s18 }
  0x13   : > { %p1440_p8 = por %p131_p7, %p130_p4  ;;  %s40_s11 = ssub.s32 %s1311_s24, %s1686_s29 }
  0x14   : > { %s120_s12 = sadd.s32 1, %s1279_s16  ;;  %s42_s13 = sor.u32 %s41_s7, %s40_s11 }
  0x15   : > { %s117_s14 = sor.u32 %s116_s8, %s40_s11  ;;  %p43_p9 = scmp.eq.s32.totalorder %s42_s13, 0 }
  0x16   : > { %p118_p10 = scmp.eq.s32.totalorder %s117_s14, 0  ;;  %p1092_p11 = scmp.ge.s32.totalorder %s1315_s25, 48 }
  0x17   : > { %s1448_s26 = scalar_select %p43_p9, %s1287_s18, %s45_s9  }
  0x18   : > { %s1451_s22 = scalar_select %p118_p10, %s1279_s16, %s120_s12  }
  0x19   : > { %184 = sbr.rel (%p1092_p11) target bundleno = 40 (0x28), region = 20 }
  0x1e   : > { %187 = sbr.rel (!%p1431_p5) target bundleno = 40 (0x28), region = 24  ;;  %s189_s28 = sand.u32 (%p1431_p5), 1, %s1287_s18  }
  0x1f   : > { %s1124_s5 = smul.u32 (%p1431_p5), 40, %s1311_s24  ;;  %s1093_s29 = sshll.u32 (%p1431_p5), %s189_s28, 2 }
  0x20   : > { %s191_s9 = scalar_lea.vmem (%p1431_p5), [#allocation2], %s1093_s29 }
  0x21   : > { %s194_s27 = sadd.s32 (%p1431_p5), %s1124_s5, %s38_s30 }
  0x22   : > { %s195_s11 = scalar_lea.vmem (%p1431_p5), %s1649_s0, %s194_s27 }
  0x23   : > { %v212_v0 = vld [vmem:[%s195_s11] sm:$0x1]  ;;  %v214_v1 = vld [vmem:[%s195_s11 + $0xa] sm:$0x1]  ;;  %v216_v2 = vld [vmem:[%s195_s11 + $0x14] sm:$0x1] }
  0x24   : > { %213 = vst [vmem:[%s191_s9] sm:$0x1] %v212_v0  ;;  %v218_v3 = vld [vmem:[%s195_s11 + $0x1e] sm:$0x1] }
  0x25   : > { %215 = vst [vmem:[%s191_s9 + $0x1] sm:$0x1] %v214_v1 }
  0x26   : > { %217 = vst [vmem:[%s191_s9 + $0x2] sm:$0x1] %v216_v2 }
  0x27   : > { %219 = vst [vmem:[%s191_s9 + $0x3] sm:$0x1] %v218_v3 }
  0x28 PF: > { %p1094_p12 = scmp.ge.s32.totalorder %s1315_s25, 1  ;;  %p249_p13 = scmp.lt.s32.totalorder %s1315_s25, 49 }
  0x2a   : > { %p250_p0 = pnand %p1094_p12, %p249_p13 }
  0x2b   : > { %p293_p1 = scmp.lt.s32.totalorder (!%p250_p0), %s1291_s19, 2  ;;  %s256_s27 = sand.u32 (!%p250_p0), 1, %s1283_s17  }
  0x2c   : > { %253 = sbr.rel (%p250_p0) target bundleno = 579 (0x243), region = 62  ;;  %s1095_s29 = sshll.u32 (!%p250_p0), %s256_s27, 2 }
  0x2d   : > { %s1469_s28 = scalar_lea.vmem (!%p250_p0), [#allocation2], %s1095_s29  ;;  %s1317_s17 = smov (!%p250_p0), 104  }
  0x2e   : > { %s1318_s5 = smov (!%p250_p0), 120   ;;  %s1319_s7 = smov (!%p250_p0), 124  }
  0x2f   : > { %s1320_s8 = smov (!%p250_p0), 127   ;;  %s1321_s11 = smov (!%p250_p0), 116  }
  0x30   : > { %s1322_s9 = smov (!%p250_p0), 100   ;;  %s279_s27 = sand.u32 (!%p250_p0), 1, %s1275_s15  }
  0x31   : > { %s294_s30 = scalar_select %p293_p1, %s1291_s19, 2  ;;  %v305_v4 = vld [vmem:[%s1469_s28] sm:$0x1]  ;;  %v306_v5 = vld [vmem:[%s1469_s28 + $0x1] sm:$0x1]  ;;  %vm330_vm0 = vcmask 1043456  }
  0x32   : > { %v307_v6 = vld [vmem:[%s1469_s28 + $0x2] sm:$0x1]  ;;  %v308_v8 = vld [vmem:[%s1469_s28 + $0x3] sm:$0x1]  ;;  %317 = vst [vmem:[#allocation1] ss:$9 sm:$0xff] %v305_v4 }
  0x33   : > { %s1097_s6 = sshll.u32 %s294_s30, 3  ;;  %319 = vst [vmem:[#allocation1 + $0x1] ss:$9 sm:$0xff] %v306_v5  ;;  %v385_v10 = vld [vmem:[%s1469_s28] sm:$0x1]  ;;  %s1492_s30 = sshll.u32 %s279_s27, 3 }
  0x34   : > { %s296_s14 = scalar_lea.vmem %s1650_s1, %s1097_s6  ;;  %321 = vst [vmem:[#allocation1 + $0x2] ss:$9 sm:$0xff] %v307_v6  ;;  %v386_v11 = vld [vmem:[%s1469_s28 + $0x1] sm:$0x1]  ;;  %v387_v13 = vld [vmem:[%s1469_s28 + $0x2] sm:$0x1] }
  0x35   : > { %v1474_v7 = vld [vmem:[%s296_s14] sm:$0xff]  ;;  %323 = vst [vmem:[#allocation1 + $0x3] ss:$9 sm:$0xff] %v308_v8  ;;  %v388_v14 = vld [vmem:[%s1469_s28 + $0x3] sm:$0x1]  ;;  %p297_p2 = scmp.lt.s32.totalorder %s1299_s21, 1 }
  0x36   : > { %579 = vrot.lane.b32.xlu1 %v1474_v7, %s1317_s17  ;;  %391 = vrot.lane.b32.xlu0 %v1474_v7, %s1318_s5  ;;  %v432_v15 = vld [vmem:[%s1469_s28] sm:$0x1]  ;;  %v433_v16 = vld [vmem:[%s1469_s28 + $0x1] sm:$0x1]  ;;  %p299_p3 = scmp.lt.s32.totalorder %s1295_s20, 7  ;;  %s1323_s29 = smov 126  }
  0x37   : > { %311 = vrot.lane.b32.xlu2 %v1474_v7, %s1319_s7  ;;  %v434_v18 = vld [vmem:[%s1469_s28 + $0x2] sm:$0x1]  ;;  %v435_v19 = vld [vmem:[%s1469_s28 + $0x3] sm:$0x1]  ;;  %s298_s6 = scalar_select %p297_p2, %s1299_s21, 1  ;;  %vm327_vm1 = vcmask 31744  }
  0x38   : > { %s300_s15 = scalar_select %p299_p3, %s1295_s20, 7  ;;  %v479_v20 = vld [vmem:[%s1469_s28] sm:$0x1]  ;;  %v480_v21 = vld [vmem:[%s1469_s28 + $0x1] sm:$0x1] }
  0x39   : > { %s1098_s12 = sshll.u32 %s298_s6, 3  ;;  %v481_v23 = vld [vmem:[%s1469_s28 + $0x2] sm:$0x1]  ;;  %v482_v24 = vld [vmem:[%s1469_s28 + $0x3] sm:$0x1]  ;;  %s1326_s27 = smov 117  }
  0x3a   : > { %s302_s13 = sadd.s32 %s1098_s12, %s300_s15  ;;  %v526_v25 = vld [vmem:[%s1469_s28] sm:$0x1]  ;;  %v527_v26 = vld [vmem:[%s1469_s28 + $0x1] sm:$0x1]  ;;  %v528_v28 = vld [vmem:[%s1469_s28 + $0x2] sm:$0x1] }
  0x3b   : > { %s1099_s14 = sshll.u32 %s302_s13, 3  ;;  %v529_v29 = vld [vmem:[%s1469_s28 + $0x3] sm:$0x1]  ;;  %v573_v30 = vld [vmem:[%s1469_s28] sm:$0x1]  ;;  %s1328_s6 = smov 107  }
  0x3c   : > { %v324_v9 = vld [vmem:[#allocation1] sm:$0xff]  ;;  %s1503_s7 = scalar_lea.vmem %s1653_s4, %s1099_s14  ;;  %v574_v31 = vld [vmem:[%s1469_s28 + $0x1] sm:$0x1]  ;;  %v575_v33 = vld [vmem:[%s1469_s28 + $0x2] sm:$0x1]  ;;  %s1329_s15 = smov 106  }
  0x3d   : > { %353 = vst [vmem:[#allocation1] ss:$9 sm:$0xff] %v305_v4  ;;  %v576_v34 = vld [vmem:[%s1469_s28 + $0x3] sm:$0x1]  ;;  %v620_v35 = vld [vmem:[%s1469_s28] sm:$0x1] }
  0x3e   : > { %325 = vrot.lane.b32.xlu1 %v324_v9, %s1320_s8  ;;  %355 = vst [vmem:[#allocation1 + $0x1] ss:$9 sm:$0xff] %v306_v5  ;;  %s1324_s8 = smov 118   ;;  %v621_v36 = vld [vmem:[%s1469_s28 + $0x1] sm:$0x1]  ;;  %s1330_s12 = smov 96  }
  0x3f   : > { %357 = vst [vmem:[#allocation1 + $0x2] ss:$9 sm:$0xff] %v307_v6  ;;  %438 = vrot.lane.b32.xlu2 %v1474_v7, %s1321_s11  ;;  %v622_v38 = vld [vmem:[%s1469_s28 + $0x2] sm:$0x1]  ;;  %v623_v39 = vld [vmem:[%s1469_s28 + $0x3] sm:$0x1] }
  0x40   : > { %359 = vst [vmem:[#allocation1 + $0x3] ss:$9 sm:$0xff] %v308_v8  ;;  %v667_v40 = vld [vmem:[%s1469_s28] sm:$0x1]  ;;  %v668_v41 = vld [vmem:[%s1469_s28 + $0x1] sm:$0x1] }
  0x41   : > { %v669_v43 = vld [vmem:[%s1469_s28 + $0x2] sm:$0x1]  ;;  %v670_v44 = vld [vmem:[%s1469_s28 + $0x3] sm:$0x1]  ;;  %s1550_s28 = scalar_lea.vmem [#allocation3], %s1492_s30  ;;  %p1118_p4 = scmp.ne.s32.totalorder %s1291_s19, 0 }
  0x47   : > { %v1484_v12 = vld [vmem:[#allocation1] sm:$0xff]  ;;  %626 = vrot.lane.b32.xlu2 %v1474_v7, %s1322_s9  ;;  %s1325_s9 = smov 112  }
  0x48   : > { %397 = vst [vmem:[#allocation1] ss:$9 sm:$0xff] %v385_v10  ;;  %1102 = vmatpush.msk.msra.mxu1 %vm330_vm0, %v1484_v12 }
  0x49   : > { %399 = vst [vmem:[#allocation1 + $0x1] ss:$9 sm:$0xff] %v386_v11  ;;  %1103 = vmatmul.msk.f32.vlgmr.msra.gmra.mxu1 %vm327_vm1, %v1474_v7 }
  0x4a   : > { %401 = vst [vmem:[#allocation1 + $0x2] ss:$9 sm:$0xff] %v387_v13 }
  0x4b   : > { %403 = vst [vmem:[#allocation1 + $0x3] ss:$9 sm:$0xff] %v388_v14 }
  0x52   : > { %v404_v17 = vld [vmem:[#allocation1] sm:$0xff] }
  0x53   : > { %405 = vrot.lane.b32.xlu0 %v404_v17, %s1323_s29  ;;  %444 = vst [vmem:[#allocation1] ss:$9 sm:$0xff] %v432_v15  ;;  %s1327_s29 = smov 108  }
  0x54   : > { %446 = vst [vmem:[#allocation1 + $0x1] ss:$9 sm:$0xff] %v433_v16 }
  0x55   : > { %448 = vst [vmem:[#allocation1 + $0x2] ss:$9 sm:$0xff] %v434_v18 }
  0x56   : > { %450 = vst [vmem:[#allocation1 + $0x3] ss:$9 sm:$0xff] %v435_v19 }
  0x5d   : > { %v451_v22 = vld [vmem:[#allocation1] sm:$0xff] }
  0x5e   : > { %452 = vrot.lane.b32.xlu1 %v451_v22, %s1324_s8  ;;  %491 = vst [vmem:[#allocation1] ss:$9 sm:$0xff] %v479_v20 }
  0x5f   : > { %493 = vst [vmem:[#allocation1 + $0x1] ss:$9 sm:$0xff] %v480_v21 }
  0x60   : > { %495 = vst [vmem:[#allocation1 + $0x2] ss:$9 sm:$0xff] %v481_v23 }
  0x61   : > { %497 = vst [vmem:[#allocation1 + $0x3] ss:$9 sm:$0xff] %v482_v24 }
  0x66   : > { %485 = vrot.lane.b32.xlu1 %v1474_v7, %s1325_s9 }
  0x68   : > { %v498_v27 = vld [vmem:[#allocation1] sm:$0xff] }
  0x69   : > { %538 = vst [vmem:[#allocation1] ss:$9 sm:$0xff] %v526_v25  ;;  %499 = vrot.lane.b32.xlu2 %v498_v27, %s1326_s27 }
  0x6a   : > { %540 = vst [vmem:[#allocation1 + $0x1] ss:$9 sm:$0xff] %v527_v26 }
  0x6b   : > { %542 = vst [vmem:[#allocation1 + $0x2] ss:$9 sm:$0xff] %v528_v28 }
  0x6c   : > { %544 = vst [vmem:[#allocation1 + $0x3] ss:$9 sm:$0xff] %v529_v29 }
  0x6e   : > { %532 = vrot.lane.b32.xlu1 %v1474_v7, %s1327_s29 }
  0x73   : > { %v545_v32 = vld [vmem:[#allocation1] sm:$0xff] }
  0x74   : > { %585 = vst [vmem:[#allocation1] ss:$9 sm:$0xff] %v573_v30 }
  0x75   : > { %587 = vst [vmem:[#allocation1 + $0x1] ss:$9 sm:$0xff] %v574_v31 }
  0x76   : > { %589 = vst [vmem:[#allocation1 + $0x2] ss:$9 sm:$0xff] %v575_v33 }
  0x77   : > { %591 = vst [vmem:[#allocation1 + $0x3] ss:$9 sm:$0xff] %v576_v34 }
  0x7e   : > { %v592_v37 = vld [vmem:[#allocation1] sm:$0xff] }
  0x7f   : > { %593 = vrot.lane.b32.xlu0 %v592_v37, %s1327_s29  ;;  %632 = vst [vmem:[#allocation1] ss:$9 sm:$0xff] %v620_v35 }
  0x80   : > { %634 = vst [vmem:[#allocation1 + $0x1] ss:$9 sm:$0xff] %v621_v36 }
  0x81   : > { %636 = vst [vmem:[#allocation1 + $0x2] ss:$9 sm:$0xff] %v622_v38 }
  0x82   : > { %638 = vst [vmem:[#allocation1 + $0x3] ss:$9 sm:$0xff] %v623_v39 }
  0x89   : > { %v639_v42 = vld [vmem:[#allocation1] sm:$0xff] }
  0x8a   : > { %640 = vrot.lane.b32.xlu0 %v639_v42, %s1328_s6  ;;  %679 = vst [vmem:[#allocation1] ss:$9 sm:$0xff] %v667_v40 }
  0x8b   : > { %681 = vst [vmem:[#allocation1 + $0x1] ss:$9 sm:$0xff] %v668_v41 }
  0x8c   : > { %683 = vst [vmem:[#allocation1 + $0x2] ss:$9 sm:$0xff] %v669_v43 }
  0x8d   : > { %685 = vst [vmem:[#allocation1 + $0x3] ss:$9 sm:$0xff] %v670_v44 }
  0x91   : > { %v312_v47 = vpop.permute.xlu2 %311 }
  0x92   : > { %546 = vrot.lane.b32.xlu0 %v545_v32, %s1321_s11 }
  0x94   : > { %v686_v45 = vld [vmem:[#allocation1] sm:$0xff] }
  0x95   : > { %687 = vrot.lane.b32.xlu2 %v686_v45, %s1329_s15 }
  0x99   : > { %v439_v48 = vpop.permute.xlu2 %438 }
  0x9a   : > { %673 = vrot.lane.b32.xlu0 %v1474_v7, %s1330_s12 }
  0xa1   : > { %v627_v50 = vpop.permute.xlu2 %626 }
  0xa8   : > { %v580_v46 = vpop.permute.xlu1 %579  ;;  %v392_v51 = vpop.permute.xlu0 %391 }
  0xb0   : > { %v326_v49 = vpop.permute.xlu1 %325 }
  0xb1   : > { %1100 = vmatpush.msk.msra.mxu0 %vm330_vm0, %v326_v49 }
  0xb2   : > { %1101 = vmatmul.msk.f32.vlgmr.msra.gmra.mxu0 %vm327_vm1, %v312_v47 }
  0xc3   : > { %v500_v52 = vpop.permute.xlu2 %499 }
  0xc4   : > { %1108 = vmatpush.msk.msrb.mxu0 %vm330_vm0, %v500_v52 }
  0xc5   : > { %v406_v53 = vpop.permute.xlu0 %405 }
  0xc6   : > { %1104 = vmatpush.msk.msra.mxu2 %vm330_vm0, %v406_v53  ;;  %v382_v62 = vpop.f32.mrf.mxu1 }
  0xc7   : > { %1105 = vmatmul.msk.f32.vlgmr.msra.gmra.mxu2 %vm327_vm1, %v392_v51 }
  0xd0   : > { %v453_v54 = vpop.permute.xlu1 %452 }
  0xd1   : > { %1106 = vmatpush.msk.msra.mxu3 %vm330_vm0, %v453_v54 }
  0xd2   : > { %1107 = vmatmul.msk.f32.vlgmr.msra.gmra.mxu3 %vm327_vm1, %v439_v48 }
  0xd8   : > { %v486_v55 = vpop.permute.xlu1 %485 }
  0xd9   : > { %1109 = vmatmul.msk.f32.vlgmr.msrb.gmra.mxu0 %vm327_vm1, %v486_v55 }
  0xe0   : > { %v533_v59 = vpop.permute.xlu1 %532 }
  0xef   : > { %v688_v56 = vpop.permute.xlu2 %687 }
  0xf0   : > { %1116 = vmatpush.msk.msra.mxu0 %vm330_vm0, %v688_v56 }
  0xf1   : > { %v594_v57 = vpop.permute.xlu0 %593 }
  0xf2   : > { %1112 = vmatpush.msk.msrb.mxu2 %vm330_vm0, %v594_v57 }
  0xf3   : > { %1113 = vmatmul.msk.f32.vlgmr.msrb.gmra.mxu2 %vm327_vm1, %v580_v46 }
  0xfc   : > { %v641_v58 = vpop.permute.xlu0 %640 }
  0xfd   : > { %1114 = vmatpush.msk.msrb.mxu3 %vm330_vm0, %v641_v58 }
  0xfe   : > { %1115 = vmatmul.msk.f32.vlgmr.msrb.gmra.mxu3 %vm327_vm1, %v627_v50 }
 0x104   : > { %v547_v60 = vpop.permute.xlu0 %546 }
 0x105   : > { %1110 = vmatpush.msk.msrb.mxu1 %vm330_vm0, %v547_v60 }
 0x106   : > { %1111 = vmatmul.msk.f32.vlgmr.msrb.gmra.mxu1 %vm327_vm1, %v533_v59 }
 0x10c   : > { %v674_v61 = vpop.permute.xlu0 %673 }
 0x10d   : > { %1117 = vmatmul.msk.f32.vlgmr.msra.gmra.mxu0 %vm327_vm1, %v674_v61 }
 0x12f   : > { %v350_v63 = vpop.f32.mrf.mxu0 }
 0x130   : > { %v383_v0 = vadd.f32 %v382_v62, %v350_v63 }
 0x14a   : > { %v428_v1 = vpop.f32.mrf.mxu2 }
 0x14b   : > { %v431_v2 = vadd.f32 %v428_v1, %v383_v0 }
 0x155   : > { %v475_v3 = vpop.f32.mrf.mxu3 }
 0x156   : > { %v478_v4 = vadd.f32 %v475_v3, %v431_v2  ;;  %v522_v5 = vpop.f32.mrf.mxu0 }
 0x158   : > { %v525_v6 = vadd.f32 %v522_v5, %v478_v4 }
 0x176   : > { %v616_v9 = vpop.f32.mrf.mxu2 }
 0x181   : > { %v663_v11 = vpop.f32.mrf.mxu3 }
 0x183   : > { %v569_v7 = vpop.f32.mrf.mxu1 }
 0x184   : > { %v572_v8 = vadd.f32 %v569_v7, %v525_v6 }
 0x186   : > { %v619_v10 = vadd.f32 %v616_v9, %v572_v8 }
 0x187   : > { %717 = sbr.rel (%p1118_p4) target bundleno = 405 (0x195), region = 70 }
 0x188   : > { %v666_v12 = vadd.f32 %v663_v11, %v619_v10 }
 0x18a   : > { %v710_v13 = vpop.f32.mrf.mxu0 }
 0x18b   : > { %v713_v14 = vadd.f32 %v710_v13, %v666_v12 }
 0x18c   : > { %vm718_vm2 = vcmask 647168   ;;  %v1331_v15 = vmov 0.0  }
 0x18d   : > { %719 = vst.msk [vmem:[%s1550_s28] sm:$0x1] %vm718_vm2, %v1331_v15 }
 0x18e   : > { %720 = vst.msk [vmem:[%s1550_s28 + $0x1] sm:$0x1] %vm718_vm2, %v1331_v15 }
 0x18f   : > { %721 = vst.msk [vmem:[%s1550_s28 + $0x2] sm:$0x1] %vm718_vm2, %v1331_v15 }
 0x190   : > { %722 = vst.msk [vmem:[%s1550_s28 + $0x3] sm:$0x1] %vm718_vm2, %v1331_v15 }
 0x191   : > { %723 = vst.msk [vmem:[%s1550_s28 + $0x4] sm:$0x1] %vm718_vm2, %v1331_v15 }
 0x192   : > { %724 = vst.msk [vmem:[%s1550_s28 + $0x5] sm:$0x1] %vm718_vm2, %v1331_v15 }
 0x193   : > { %725 = vst.msk [vmem:[%s1550_s28 + $0x6] sm:$0x1] %vm718_vm2, %v1331_v15 }
 0x194   : > { %726 = vst.msk [vmem:[%s1550_s28 + $0x7] sm:$0x1] %vm718_vm2, %v1331_v15 }
 0x195 PF: > { %v727_v16 = vld [vmem:[%s1550_s28] sm:$0x1]  ;;  %vm758_vm3 = vcmask 647168   ;;  %v728_v17 = vld [vmem:[%s1550_s28 + $0x1] sm:$0x1]  ;;  %v736_v18 = vrot.slane %v713_v14, 1 }
 0x196   : > { %v750_v19 = vadd.f32 %v727_v16, %v713_v14  ;;  %v729_v20 = vld [vmem:[%s1550_s28 + $0x2] sm:$0x1]  ;;  %v737_v21 = vrot.slane %v713_v14, 2  ;;  %v738_v23 = vrot.slane %v713_v14, 3  ;;  %v739_v26 = vrot.slane %v713_v14, 4  ;;  %p1119_p5 = scmp.ne.s32.totalorder %s1291_s19, 2 }
 0x197   : > { %v730_v22 = vld [vmem:[%s1550_s28 + $0x3] sm:$0x1]  ;;  %v751_v24 = vadd.f32 %v736_v18, %v728_v17  ;;  %v740_v28 = vrot.slane %v713_v14, 5  ;;  %v741_v32 = vrot.slane %v713_v14, 6  ;;  %v742_v33 = vrot.slane %v713_v14, 7 }
 0x198   : > { %v731_v25 = vld [vmem:[%s1550_s28 + $0x4] sm:$0x1]  ;;  %759 = vst.msk [vmem:[%s1550_s28] sm:$0x1] %vm758_vm3, %v750_v19  ;;  %v752_v29 = vadd.f32 %v737_v21, %v729_v20  ;;  %v753_v30 = vadd.f32 %v738_v23, %v730_v22 }
 0x199   : > { %v732_v27 = vld [vmem:[%s1550_s28 + $0x5] sm:$0x1]  ;;  %760 = vst.msk [vmem:[%s1550_s28 + $0x1] sm:$0x1] %vm758_vm3, %v751_v24  ;;  %v754_v34 = vadd.f32 %v739_v26, %v731_v25 }
 0x19a   : > { %v733_v31 = vld [vmem:[%s1550_s28 + $0x6] sm:$0x1]  ;;  %v755_v35 = vadd.f32 %v740_v28, %v732_v27  ;;  %761 = vst.msk [vmem:[%s1550_s28 + $0x2] sm:$0x1] %vm758_vm3, %v752_v29 }
 0x19b   : > { %v734_v36 = vld [vmem:[%s1550_s28 + $0x7] sm:$0x1]  ;;  %v756_v37 = vadd.f32 %v741_v32, %v733_v31  ;;  %762 = vst.msk [vmem:[%s1550_s28 + $0x3] sm:$0x1] %vm758_vm3, %v753_v30  ;;  %770 = sbr.rel (%p1119_p5) target bundleno = 568 (0x238), region = 74 }
 0x19c   : > { %v757_v38 = vadd.f32 %v742_v33, %v734_v36  ;;  %763 = vst.msk [vmem:[%s1550_s28 + $0x4] sm:$0x1] %vm758_vm3, %v754_v34 }
 0x19d   : > { %764 = vst.msk [vmem:[%s1550_s28 + $0x5] sm:$0x1] %vm758_vm3, %v755_v35 }
 0x19e   : > { %765 = vst.msk [vmem:[%s1550_s28 + $0x6] sm:$0x1] %vm758_vm3, %v756_v37 }
 0x19f   : > { %766 = vst.msk [vmem:[%s1550_s28 + $0x7] sm:$0x1] %vm758_vm3, %v757_v38 }
 0x1a0   : > { %v771_v39 = vld [vmem:[%s1550_s28] sm:$0x1]  ;;  %v1228_v40 = vld [vmem:[%s1651_s2] ss:$0 sm:$0xff]  ;;  %v772_v41 = vld [vmem:[%s1550_s28 + $0x1] sm:$0x1] }
 0x1a1   : > { %v773_v42 = vld [vmem:[%s1550_s28 + $0x2] sm:$0x1]  ;;  %v783_v45 = vrot.slane %v1228_v40, 1  ;;  %v784_v46 = vrot.slane %v1228_v40, 2  ;;  %v785_v47 = vrot.slane %v1228_v40, 3  ;;  %v786_v48 = vrot.slane %v1228_v40, 4 }
 0x1a2   : > { %v774_v43 = vld [vmem:[%s1550_s28 + $0x3] sm:$0x1]  ;;  %v787_v50 = vrot.slane %v1228_v40, 5  ;;  %v788_v51 = vrot.slane %v1228_v40, 6  ;;  %v797_v52 = vmul.f32 %v1228_v40, %v771_v39  ;;  %v789_v54 = vrot.slane %v1228_v40, 7 }
 0x1a3   : > { %v775_v44 = vld [vmem:[%s1550_s28 + $0x4] sm:$0x1]  ;;  %v798_v55 = vmul.f32 %v783_v45, %v772_v41  ;;  %v799_v56 = vmul.f32 %v784_v46, %v773_v42  ;;  %v800_v57 = vmul.f32 %v785_v47, %v774_v43  ;;  %vm830_vm4 = vcmask 654336  }
 0x1a4   : > { %v776_v49 = vld [vmem:[%s1550_s28 + $0x5] sm:$0x1]  ;;  %v801_v59 = vmul.f32 %v786_v48, %v775_v44  ;;  %813 = vst [vmem:[#allocation1] ss:$9 sm:$0xff] %v797_v52  ;;  %v836_v63 = vmul.f32 %v797_v52, %v797_v52  ;;  %vm834_vm5 = vcmask 7168   ;;  %vm872_vm6 = vcmask 15368  }
 0x1a5   : > { %v777_v53 = vld [vmem:[%s1550_s28 + $0x6] sm:$0x1]  ;;  %v802_v60 = vmul.f32 %v787_v50, %v776_v49  ;;  %815 = vst [vmem:[#allocation1 + $0x1] ss:$9 sm:$0xff] %v798_v55  ;;  %v837_v0 = vmul.f32 %v798_v55, %v798_v55  ;;  %v838_v1 = vmul.f32 %v799_v56, %v799_v56  ;;  %v839_v3 = vmul.f32 %v800_v57, %v800_v57 }
 0x1a6   : > { %v778_v58 = vld [vmem:[%s1550_s28 + $0x7] sm:$0x1]  ;;  %v803_v61 = vmul.f32 %v788_v51, %v777_v53  ;;  %817 = vst [vmem:[#allocation1 + $0x2] ss:$9 sm:$0xff] %v799_v56  ;;  %v840_v5 = vmul.f32 %v801_v59, %v801_v59 }
 0x1a7   : > { %v804_v62 = vmul.f32 %v789_v54, %v778_v58  ;;  %819 = vst [vmem:[#allocation1 + $0x3] ss:$9 sm:$0xff] %v800_v57  ;;  %v841_v6 = vmul.f32 %v802_v60, %v802_v60 }
 0x1a8   : > { %821 = vst [vmem:[#allocation1 + $0x4] ss:$9 sm:$0xff] %v801_v59  ;;  %v842_v7 = vmul.f32 %v803_v61, %v803_v61 }
 0x1a9   : > { %823 = vst [vmem:[#allocation1 + $0x5] ss:$9 sm:$0xff] %v802_v60  ;;  %v843_v8 = vmul.f32 %v804_v62, %v804_v62 }
 0x1aa   : > { %825 = vst [vmem:[#allocation1 + $0x6] ss:$9 sm:$0xff] %v803_v61 }
 0x1ab   : > { %827 = vst [vmem:[#allocation1 + $0x7] ss:$9 sm:$0xff] %v804_v62 }
 0x1b2   : > { %v828_v2 = vld [vmem:[#allocation1] sm:$0xff] }
 0x1b3   : > { %v831_v4 = vsel %vm830_vm4, %v828_v2, 0.0  ;;  %852 = vst [vmem:[#allocation1] ss:$9 sm:$0xff] %v836_v63 }
 0x1b4   : > { %832 = vadd.xlane.f32.xlu0 %v831_v4  ;;  %854 = vst [vmem:[#allocation1 + $0x1] ss:$9 sm:$0xff] %v837_v0 }
 0x1b5   : > { %856 = vst [vmem:[#allocation1 + $0x2] ss:$9 sm:$0xff] %v838_v1 }
 0x1b6   : > { %858 = vst [vmem:[#allocation1 + $0x3] ss:$9 sm:$0xff] %v839_v3 }
 0x1b7   : > { %860 = vst [vmem:[#allocation1 + $0x4] ss:$9 sm:$0xff] %v840_v5 }
 0x1b8   : > { %862 = vst [vmem:[#allocation1 + $0x5] ss:$9 sm:$0xff] %v841_v6 }
 0x1b9   : > { %864 = vst [vmem:[#allocation1 + $0x6] ss:$9 sm:$0xff] %v842_v7 }
 0x1ba   : > { %866 = vst [vmem:[#allocation1 + $0x7] ss:$9 sm:$0xff] %v843_v8 }
 0x1c1   : > { %v867_v9 = vld [vmem:[#allocation1] sm:$0xff] }
 0x1c2   : > { %v869_v10 = vsel %vm830_vm4, %v867_v9, 0.0 }
 0x1c3   : > { %870 = vadd.xlane.f32.xlu0 %v869_v10 }
 0x227   : > { %v833_v11 = vpop.xlane.xlu0 %832 }
 0x228   : > { %835 = vst.msk [vmem:[%s1503_s7] sm:$0xff] %vm834_vm5, %v833_v11 }
 0x236   : > { %v871_v12 = vpop.xlane.xlu0 %870 }
 0x237   : > { %873 = vst.msk [vmem:[%s1503_s7] sm:$0xff] %vm872_vm6, %v871_v12 }
 0x238 PF: > { %888 = sbr.rel (!%p1440_p8) target bundleno = 579 (0x243), region = 78  ;;  %s1121_s19 = sshll.u32 (%p1440_p8), %s1299_s21, 6  ;;  %v908_v13 = vld [vmem:[%s1550_s28] sm:$0x1] (%p1440_p8)  ;;  %v910_v14 = vld [vmem:[%s1550_s28 + $0x1] sm:$0x1] (%p1440_p8) }
 0x239   : > { %s890_s13 = sadd.s32 (%p1440_p8), %s1295_s20, %s1121_s19  ;;  %v912_v15 = vld [vmem:[%s1550_s28 + $0x2] sm:$0x1] (%p1440_p8) }
 0x23a   : > { %s891_s5 = scalar_lea.vmem (%p1440_p8), %s1652_s3, %s890_s13  ;;  %v914_v16 = vld [vmem:[%s1550_s28 + $0x3] sm:$0x1] (%p1440_p8) }
 0x23b   : > { %909 = vst [vmem:[%s891_s5] sm:$0x1] (%p1440_p8), %v908_v13  ;;  %v916_v17 = vld [vmem:[%s1550_s28 + $0x4] sm:$0x1] (%p1440_p8) }
 0x23c   : > { %911 = vst [vmem:[%s891_s5 + $0x8] sm:$0x1] (%p1440_p8), %v910_v14  ;;  %v918_v18 = vld [vmem:[%s1550_s28 + $0x5] sm:$0x1] (%p1440_p8) }
 0x23d   : > { %913 = vst [vmem:[%s891_s5 + $0x10] sm:$0x1] %v912_v15  ;;  %v920_v19 = vld [vmem:[%s1550_s28 + $0x6] sm:$0x1] }
 0x23e   : > { %915 = vst [vmem:[%s891_s5 + $0x18] sm:$0x1] %v914_v16  ;;  %v922_v20 = vld [vmem:[%s1550_s28 + $0x7] sm:$0x1] }
 0x23f   : > { %917 = vst [vmem:[%s891_s5 + $0x20] sm:$0x1] %v916_v17 }
 0x240   : > { %919 = vst [vmem:[%s891_s5 + $0x28] sm:$0x1] %v918_v18 }
 0x241   : > { %921 = vst [vmem:[%s891_s5 + $0x30] sm:$0x1] %v920_v19 }
 0x242   : > { %923 = vst [vmem:[%s891_s5 + $0x38] sm:$0x1] %v922_v20 }
 0x243 PF: > { %s15_s25 = sadd.s32 1, %s1315_s25   ;;  %s1664_s19 = sld [smem:[#allocation4_spill]] }
 0x244   : > { %p12_p6 = scmp.ge.s32.totalorder %s15_s25, 50   ;;  %s1665_s10 = sld [smem:[#allocation5_spill]] }
 0x245   : > { %s1666_s7 = sld [smem:[#allocation6_spill]]  ;;  %s1668_s15 = smov %s1279_s16 }
 0x246   : > { %s1667_s8 = sld [smem:[#allocation7_spill]]  ;;  %s1669_s16 = smov %s1451_s22 }
 0x247   : > { %s1670_s17 = smov %s1287_s18  ;;  %s1671_s18 = smov %s1448_s26 }
 0x248   : > { %s1672_s20 = smov %s1307_s23  ;;  %s1673_s21 = smov %s1311_s24 }
 0x249   :  { %14 = sbr.rel (!%p12_p6) target bundleno = 6 (0x6), region = 206 }
 0x24a   : > { %s1674_s22 = smov %s1665_s10 }
 0x24b   : > { %s1675_s23 = smov %s1666_s7 }
 0x24c   : > { %s1676_s24 = smov %s1667_s8 }

// kernel: conv_block_3d.6
= control target key start
LH: loop header
LB: loop body
LE: loop exit
PB: predicated region body
PF: predicated region fallthrough
CT: control target
= control target key end

     0   :  { %s1502_s15 = smov 0   ;;  %s1504_s16 = smov 0   ;;  %s1812_s0 = inlined_call_operand.vmem [shape: f32[2,8,10,1,110], index: 0, kind: input, shape index: {}]   ;;  %s1813_s1 = inlined_call_operand.vmem [shape: f32[3,8,72], index: 1, kind: input, shape index: {}]   ;;  %s1814_s2 = inlined_call_operand.vmem [shape: f32[1,80], index: 2, kind: input, shape index: {}]   ;;  %s1815_s3 = inlined_call_operand.vmem [shape: f32[2,8,8,1,80], index: 3, kind: output, shape index: {0}]   ;;  %s1816_s4 = inlined_call_operand.vmem [shape: f32[2,8,8,2], index: 4, kind: output, shape index: {1}]  }
   0x1   :  { %s1506_s17 = smov 0   ;;  %s1508_s18 = smov 0  }
   0x2   :  { %s1510_s19 = smov 0   ;;  %s1512_s20 = smov 0  }
   0x3   :  { %s1514_s21 = smov 0   ;;  %s1516_s22 = smov 0  }
   0x4   :  { %s1518_s23 = smov 0   ;;  %s1520_s24 = smov 0  }
   0x5   :  { %s1522_s25 = smov 0  }
   0x6 LB: > { %1821 = sst [smem:[#allocation4_spill]] %s1446_s22  ;;  %s27_s26 = sadd.s32 1, %s1446_s22  ;;  %s1458_s25 = sphi %s1522_s25, %s15_s25   ;;  %s1454_s24 = sphi %s1520_s24, %s1839_s24   ;;  %s1450_s23 = sphi %s1518_s23, %s1838_s23   ;;  %s1446_s22 = sphi %s1516_s22, %s1837_s22   ;;  %s1442_s21 = sphi %s1514_s21, %s1836_s21   ;;  %s1438_s20 = sphi %s1512_s20, %s1835_s20   ;;  %s1434_s19 = sphi %s1510_s19, %s1827_s19   ;;  %s1430_s18 = sphi %s1508_s18, %s1834_s18   ;;  %s1426_s17 = sphi %s1506_s17, %s1833_s17   ;;  %s1422_s16 = sphi %s1504_s16, %s1832_s16   ;;  %s1418_s15 = sphi %s1502_s15, %s1831_s15  }
   0x7   : > { %p28_p0 = scmp.ge.s32.totalorder %s27_s26, 3  ;;  %s30_s27 = sadd.s32 1, %s1450_s23 }
   0x8   : > { %s1239_s28 = sadd.s32 4294967295, %s1458_s25   ;;  %s34_s29 = sadd.s32 1, %s1454_s24 }
   0x9   : > { %s1841_s26 = smov (%p28_p0, %s27_s26), 0  ;;  %s1843_s27 = smov (!%p28_p0, %s30_s27), %s1450_s23 }
   0xa   : > { %1822 = sst [smem:[#allocation5_spill]] %s1841_s26  ;;  %p52_p1 = scmp.ne.s32.totalorder %s1430_s18, %s1426_s17 }
   0xb   : > { %p32_p2 = scmp.ge.s32.totalorder %s1843_s27, 8  ;;  %p53_p3 = scmp.eq.s32.totalorder %s1458_s25, 0 }
   0xc   : > { %s38_s30 = sadd.s32 %s1446_s22, %s1450_s23  ;;  %p130_p4 = scmp.ne.s32.totalorder %s1422_s16, %s1418_s15 }
   0xd   : > { %s1845_s27 = smov (%p32_p2, %s1843_s27), 0  ;;  %s1847_s29 = smov (!%p32_p2, %s34_s29), %s1454_s24 }
   0xe   : > { %1823 = sst [smem:[#allocation6_spill]] %s1845_s27  ;;  %s39_s5 = sadd.s32 %s1845_s27, %s1841_s26 }
   0xf   : > { %p1576_p5 = por %p53_p3, %p52_p1  ;;  %p36_p6 = scmp.ge.s32.totalorder %s1847_s29, 2 }
  0x10   : > { %s41_s7 = ssub.s32 %s38_s30, %s39_s5  ;;  %s116_s8 = ssub.s32 %s1450_s23, %s1845_s27 }
  0x11   : > { %p131_p7 = scmp.eq.s32.totalorder %s1239_s28, 47  ;;  %s1849_s29 = smov (%p36_p6, %s1847_s29), 0 }
  0x12   : > { %1825 = sst [smem:[#allocation7_spill]] %s1849_s29  ;;  %s45_s9 = sadd.s32 1, %s1430_s18 }
  0x13   : > { %p1585_p8 = por %p131_p7, %p130_p4  ;;  %s40_s11 = ssub.s32 %s1454_s24, %s1849_s29 }
  0x14   : > { %s120_s12 = sadd.s32 1, %s1422_s16  ;;  %s42_s13 = sor.u32 %s41_s7, %s40_s11 }
  0x15   : > { %s117_s14 = sor.u32 %s116_s8, %s40_s11  ;;  %p43_p9 = scmp.eq.s32.totalorder %s42_s13, 0 }
  0x16   : > { %p118_p10 = scmp.eq.s32.totalorder %s117_s14, 0  ;;  %p1242_p11 = scmp.ge.s32.totalorder %s1458_s25, 48 }
  0x17   : > { %s1593_s26 = scalar_select %p43_p9, %s1430_s18, %s45_s9  }
  0x18   : > { %s1596_s22 = scalar_select %p118_p10, %s1422_s16, %s120_s12  }
  0x19   : > { %184 = sbr.rel (%p1242_p11) target bundleno = 44 (0x2c), region = 20 }
  0x1e   : > { %187 = sbr.rel (!%p1576_p5) target bundleno = 44 (0x2c), region = 24  ;;  %s189_s28 = sand.u32 (%p1576_p5), 1, %s1430_s18  }
  0x1f   : > { %s1265_s5 = smul.u32 (%p1576_p5), 80, %s1454_s24  ;;  %s1243_s29 = sshll.u32 (%p1576_p5), %s189_s28, 3 }
  0x20   : > { %s191_s9 = scalar_lea.vmem (%p1576_p5), [#allocation2], %s1243_s29 }
  0x21   : > { %s194_s27 = sadd.s32 (%p1576_p5), %s1265_s5, %s38_s30 }
  0x22   : > { %s195_s11 = scalar_lea.vmem (%p1576_p5), %s1812_s0, %s194_s27 }
  0x23   : > { %v212_v0 = vld [vmem:[%s195_s11] sm:$0x1]  ;;  %v214_v1 = vld [vmem:[%s195_s11 + $0xa] sm:$0x1]  ;;  %v216_v2 = vld [vmem:[%s195_s11 + $0x14] sm:$0x1] }
  0x24   : > { %213 = vst [vmem:[%s191_s9] sm:$0x1] %v212_v0  ;;  %v218_v3 = vld [vmem:[%s195_s11 + $0x1e] sm:$0x1]  ;;  %v220_v4 = vld [vmem:[%s195_s11 + $0x28] sm:$0x1] }
  0x25   : > { %215 = vst [vmem:[%s191_s9 + $0x1] sm:$0x1] %v214_v1  ;;  %v222_v5 = vld [vmem:[%s195_s11 + $0x32] sm:$0x1]  ;;  %v224_v6 = vld [vmem:[%s195_s11 + $0x3c] sm:$0x1] }
  0x26   : > { %217 = vst [vmem:[%s191_s9 + $0x2] sm:$0x1] %v216_v2  ;;  %v226_v7 = vld [vmem:[%s195_s11 + $0x46] sm:$0x1] }
  0x27   : > { %219 = vst [vmem:[%s191_s9 + $0x3] sm:$0x1] %v218_v3 }
  0x28   : > { %221 = vst [vmem:[%s191_s9 + $0x4] sm:$0x1] %v220_v4 }
  0x29   : > { %223 = vst [vmem:[%s191_s9 + $0x5] sm:$0x1] %v222_v5 }
  0x2a   : > { %225 = vst [vmem:[%s191_s9 + $0x6] sm:$0x1] %v224_v6 }
  0x2b   : > { %227 = vst [vmem:[%s191_s9 + $0x7] sm:$0x1] %v226_v7 }
  0x2c PF: > { %p1244_p12 = scmp.ge.s32.totalorder %s1458_s25, 1  ;;  %p273_p13 = scmp.lt.s32.totalorder %s1458_s25, 49 }
  0x2e   : > { %p274_p0 = pnand %p1244_p12, %p273_p13 }
  0x2f   : > { %p317_p1 = scmp.lt.s32.totalorder (!%p274_p0), %s1434_s19, 2  ;;  %s280_s27 = sand.u32 (!%p274_p0), 1, %s1426_s17  }
  0x30   : > { %277 = sbr.rel (%p274_p0) target bundleno = 616 (0x268), region = 69  ;;  %s1245_s30 = sshll.u32 (!%p274_p0), %s280_s27, 3 }
  0x31   : > { %s1614_s28 = scalar_lea.vmem (!%p274_p0), [#allocation2], %s1245_s30  ;;  %s1460_s17 = smov (!%p274_p0), 80  }
  0x32   : > { %s1461_s5 = smov (!%p274_p0), 112   ;;  %s1462_s7 = smov (!%p274_p0), 120  }
  0x33   : > { %s1463_s8 = smov (!%p274_p0), 104   ;;  %s1464_s11 = smov (!%p274_p0), 127  }
  0x34   : > { %s1465_s9 = smov (!%p274_p0), 72   ;;  %s1466_s27 = smov (!%p274_p0), 126  }
  0x35   : > { %s318_s29 = scalar_select %p317_p1, %s1434_s19, 2  ;;  %v329_v8 = vld [vmem:[%s1614_s28] sm:$0x1]  ;;  %v330_v9 = vld [vmem:[%s1614_s28 + $0x1] sm:$0x1]  ;;  %vm368_vm0 = vcmask 64512  }
  0x36   : > { %v331_v11 = vld [vmem:[%s1614_s28 + $0x2] sm:$0x1]  ;;  %v332_v12 = vld [vmem:[%s1614_s28 + $0x3] sm:$0x1]  ;;  %349 = vst [vmem:[#allocation1] ss:$9 sm:$0xff] %v329_v8 }
  0x37   : > { %s1247_s6 = sshll.u32 %s318_s29, 3  ;;  %v333_v13 = vld [vmem:[%s1614_s28 + $0x4] sm:$0x1]  ;;  %351 = vst [vmem:[#allocation1 + $0x1] ss:$9 sm:$0xff] %v330_v9  ;;  %s303_s29 = sand.u32 1, %s1418_s15  }
  0x38   : > { %s320_s14 = scalar_lea.vmem %s1813_s1, %s1247_s6  ;;  %v334_v14 = vld [vmem:[%s1614_s28 + $0x5] sm:$0x1]  ;;  %353 = vst [vmem:[#allocation1 + $0x2] ss:$9 sm:$0xff] %v331_v11  ;;  %v335_v15 = vld [vmem:[%s1614_s28 + $0x6] sm:$0x1] }
  0x39   : > { %v1618_v10 = vld [vmem:[%s320_s14] sm:$0xff]  ;;  %355 = vst [vmem:[#allocation1 + $0x3] ss:$9 sm:$0xff] %v332_v12  ;;  %v336_v16 = vld [vmem:[%s1614_s28 + $0x7] sm:$0x1]  ;;  %p321_p2 = scmp.lt.s32.totalorder %s1442_s21, 1 }
  0x3a   : > { %688 = vrot.lane.b32.xlu1 %v1618_v10, %s1460_s17  ;;  %440 = vrot.lane.b32.xlu0 %v1618_v10, %s1461_s5  ;;  %357 = vst [vmem:[#allocation1 + $0x4] ss:$9 sm:$0xff] %v333_v13  ;;  %v430_v18 = vld [vmem:[%s1614_s28] sm:$0x1]  ;;  %v431_v19 = vld [vmem:[%s1614_s28 + $0x1] sm:$0x1] }
  0x3b   : > { %359 = vst [vmem:[#allocation1 + $0x5] ss:$9 sm:$0xff] %v334_v14  ;;  %339 = vrot.lane.b32.xlu2 %v1618_v10, %s1462_s7  ;;  %v432_v21 = vld [vmem:[%s1614_s28 + $0x2] sm:$0x1]  ;;  %v433_v22 = vld [vmem:[%s1614_s28 + $0x3] sm:$0x1] }
  0x3c   : > { %361 = vst [vmem:[#allocation1 + $0x6] ss:$9 sm:$0xff] %v335_v15  ;;  %v434_v23 = vld [vmem:[%s1614_s28 + $0x4] sm:$0x1]  ;;  %v435_v24 = vld [vmem:[%s1614_s28 + $0x5] sm:$0x1] }
  0x3d   : > { %363 = vst [vmem:[#allocation1 + $0x7] ss:$9 sm:$0xff] %v336_v16  ;;  %v436_v25 = vld [vmem:[%s1614_s28 + $0x6] sm:$0x1]  ;;  %v437_v26 = vld [vmem:[%s1614_s28 + $0x7] sm:$0x1] }
  0x3e   : > { %v492_v27 = vld [vmem:[%s1614_s28] sm:$0x1]  ;;  %v493_v28 = vld [vmem:[%s1614_s28 + $0x1] sm:$0x1]  ;;  %v494_v30 = vld [vmem:[%s1614_s28 + $0x2] sm:$0x1] }
  0x3f   : > { %v495_v31 = vld [vmem:[%s1614_s28 + $0x3] sm:$0x1]  ;;  %v496_v32 = vld [vmem:[%s1614_s28 + $0x4] sm:$0x1]  ;;  %v497_v33 = vld [vmem:[%s1614_s28 + $0x5] sm:$0x1] }
  0x40   : > { %s1647_s30 = sshll.u32 %s303_s29, 3  ;;  %p323_p3 = scmp.lt.s32.totalorder %s1438_s20, 7  ;;  %v498_v34 = vld [vmem:[%s1614_s28 + $0x6] sm:$0x1]  ;;  %v499_v35 = vld [vmem:[%s1614_s28 + $0x7] sm:$0x1] }
  0x41   : > { %s322_s6 = scalar_select %p321_p2, %s1442_s21, 1  ;;  %v554_v36 = vld [vmem:[%s1614_s28] sm:$0x1]  ;;  %v555_v37 = vld [vmem:[%s1614_s28 + $0x1] sm:$0x1] }
  0x42   : > { %s324_s12 = scalar_select %p323_p3, %s1438_s20, 7  ;;  %v556_v39 = vld [vmem:[%s1614_s28 + $0x2] sm:$0x1]  ;;  %v557_v40 = vld [vmem:[%s1614_s28 + $0x3] sm:$0x1] }
  0x43   : > { %502 = vrot.lane.b32.xlu2 %v1618_v10, %s1463_s8  ;;  %s1248_s15 = sshll.u32 %s322_s6, 3  ;;  %s1467_s8 = smov 118   ;;  %v558_v41 = vld [vmem:[%s1614_s28 + $0x4] sm:$0x1]  ;;  %v559_v42 = vld [vmem:[%s1614_s28 + $0x5] sm:$0x1] }
  0x44   : > { %v364_v17 = vld [vmem:[#allocation1] sm:$0xff]  ;;  %s326_s13 = sadd.s32 %s1248_s15, %s324_s12  ;;  %v560_v43 = vld [vmem:[%s1614_s28 + $0x6] sm:$0x1]  ;;  %v561_v44 = vld [vmem:[%s1614_s28 + $0x7] sm:$0x1]  ;;  %s1471_s29 = smov 108  }
  0x45   : > { %365 = vrot.lane.b32.xlu1 %v364_v17, %s1464_s11  ;;  %391 = vst [vmem:[#allocation1] ss:$9 sm:$0xff] %v329_v8  ;;  %s1249_s14 = sshll.u32 %s326_s13, 3  ;;  %s1468_s11 = smov 96   ;;  %v616_v45 = vld [vmem:[%s1614_s28] sm:$0x1] }
  0x46   : > { %393 = vst [vmem:[#allocation1 + $0x1] ss:$9 sm:$0xff] %v330_v9  ;;  %s1657_s7 = scalar_lea.vmem %s1816_s4, %s1249_s14  ;;  %v617_v46 = vld [vmem:[%s1614_s28 + $0x1] sm:$0x1]  ;;  %v618_v48 = vld [vmem:[%s1614_s28 + $0x2] sm:$0x1] }
  0x47   : > { %395 = vst [vmem:[#allocation1 + $0x2] ss:$9 sm:$0xff] %v331_v11  ;;  %v619_v49 = vld [vmem:[%s1614_s28 + $0x3] sm:$0x1]  ;;  %v620_v50 = vld [vmem:[%s1614_s28 + $0x4] sm:$0x1] }
  0x48   : > { %397 = vst [vmem:[#allocation1 + $0x3] ss:$9 sm:$0xff] %v332_v12  ;;  %v621_v51 = vld [vmem:[%s1614_s28 + $0x5] sm:$0x1]  ;;  %v622_v52 = vld [vmem:[%s1614_s28 + $0x6] sm:$0x1] }
  0x49   : > { %399 = vst [vmem:[#allocation1 + $0x4] ss:$9 sm:$0xff] %v333_v13  ;;  %v623_v53 = vld [vmem:[%s1614_s28 + $0x7] sm:$0x1]  ;;  %v678_v54 = vld [vmem:[%s1614_s28] sm:$0x1] }
  0x4a   : > { %401 = vst [vmem:[#allocation1 + $0x5] ss:$9 sm:$0xff] %v334_v14  ;;  %v679_v55 = vld [vmem:[%s1614_s28 + $0x1] sm:$0x1]  ;;  %v680_v57 = vld [vmem:[%s1614_s28 + $0x2] sm:$0x1] }
  0x4b   : > { %403 = vst [vmem:[#allocation1 + $0x6] ss:$9 sm:$0xff] %v335_v15  ;;  %750 = vrot.lane.b32.xlu2 %v1618_v10, %s1465_s9  ;;  %s1469_s9 = smov 117   ;;  %v681_v58 = vld [vmem:[%s1614_s28 + $0x3] sm:$0x1]  ;;  %s1472_s6 = smov 107  }
  0x4c   : > { %405 = vst [vmem:[#allocation1 + $0x7] ss:$9 sm:$0xff] %v336_v16  ;;  %v682_v59 = vld [vmem:[%s1614_s28 + $0x4] sm:$0x1]  ;;  %v683_v60 = vld [vmem:[%s1614_s28 + $0x5] sm:$0x1] }
  0x4d   : > { %v684_v61 = vld [vmem:[%s1614_s28 + $0x6] sm:$0x1]  ;;  %v685_v62 = vld [vmem:[%s1614_s28 + $0x7] sm:$0x1]  ;;  %v740_v63 = vld [vmem:[%s1614_s28] sm:$0x1] }
  0x4e   : > { %v741_v0 = vld [vmem:[%s1614_s28 + $0x1] sm:$0x1]  ;;  %v742_v2 = vld [vmem:[%s1614_s28 + $0x2] sm:$0x1]  ;;  %v743_v3 = vld [vmem:[%s1614_s28 + $0x3] sm:$0x1] }
  0x4f   : > { %v744_v4 = vld [vmem:[%s1614_s28 + $0x4] sm:$0x1]  ;;  %v745_v5 = vld [vmem:[%s1614_s28 + $0x5] sm:$0x1]  ;;  %v746_v6 = vld [vmem:[%s1614_s28 + $0x6] sm:$0x1] }
  0x50   : > { %v747_v7 = vld [vmem:[%s1614_s28 + $0x7] sm:$0x1]  ;;  %v802_v8 = vld [vmem:[%s1614_s28] sm:$0x1]  ;;  %v803_v9 = vld [vmem:[%s1614_s28 + $0x1] sm:$0x1] }
  0x51   : > { %v804_v12 = vld [vmem:[%s1614_s28 + $0x2] sm:$0x1]  ;;  %v805_v14 = vld [vmem:[%s1614_s28 + $0x3] sm:$0x1]  ;;  %v806_v15 = vld [vmem:[%s1614_s28 + $0x4] sm:$0x1] }
  0x52   : > { %v807_v16 = vld [vmem:[%s1614_s28 + $0x5] sm:$0x1]  ;;  %v808_v17 = vld [vmem:[%s1614_s28 + $0x6] sm:$0x1]  ;;  %s1473_s12 = smov 116   ;;  %s1474_s15 = smov 106  }
  0x53   : > { %v406_v20 = vld [vmem:[#allocation1] sm:$0xff]  ;;  %s1475_s13 = smov 64   ;;  %p1259_p4 = scmp.ne.s32.totalorder %s1434_s19, 0 }
  0x54   : > { %450 = vst [vmem:[#allocation1] ss:$9 sm:$0xff] %v430_v18  ;;  %425 = vmatpush.msra.mxu1 %v406_v20  ;;  %v809_v18 = vld [vmem:[%s1614_s28 + $0x7] sm:$0x1]  ;;  %s1713_s28 = scalar_lea.vmem [#allocation3], %s1647_s30 }
  0x55   : > { %452 = vst [vmem:[#allocation1 + $0x1] ss:$9 sm:$0xff] %v431_v19  ;;  %1251 = vmatmul.msk.f32.vlgmr.msra.gmra.mxu1 %vm368_vm0, %v1618_v10 }
  0x56   : > { %454 = vst [vmem:[#allocation1 + $0x2] ss:$9 sm:$0xff] %v432_v21 }
  0x57   : > { %456 = vst [vmem:[#allocation1 + $0x3] ss:$9 sm:$0xff] %v433_v22 }
  0x58   : > { %458 = vst [vmem:[#allocation1 + $0x4] ss:$9 sm:$0xff] %v434_v23 }
  0x59   : > { %460 = vst [vmem:[#allocation1 + $0x5] ss:$9 sm:$0xff] %v435_v24 }
  0x5a   : > { %462 = vst [vmem:[#allocation1 + $0x6] ss:$9 sm:$0xff] %v436_v25 }
  0x5b   : > { %464 = vst [vmem:[#allocation1 + $0x7] ss:$9 sm:$0xff] %v437_v26 }
  0x62   : > { %v465_v29 = vld [vmem:[#allocation1] sm:$0xff] }
  0x63   : > { %466 = vrot.lane.b32.xlu0 %v465_v29, %s1466_s27  ;;  %512 = vst [vmem:[#allocation1] ss:$9 sm:$0xff] %v492_v27  ;;  %s1470_s27 = smov 88  }
  0x64   : > { %514 = vst [vmem:[#allocation1 + $0x1] ss:$9 sm:$0xff] %v493_v28 }
  0x65   : > { %516 = vst [vmem:[#allocation1 + $0x2] ss:$9 sm:$0xff] %v494_v30 }
  0x66   : > { %518 = vst [vmem:[#allocation1 + $0x3] ss:$9 sm:$0xff] %v495_v31 }
  0x67   : > { %520 = vst [vmem:[#allocation1 + $0x4] ss:$9 sm:$0xff] %v496_v32 }
  0x68   : > { %522 = vst [vmem:[#allocation1 + $0x5] ss:$9 sm:$0xff] %v497_v33 }
  0x69   : > { %524 = vst [vmem:[#allocation1 + $0x6] ss:$9 sm:$0xff] %v498_v34 }
  0x6a   : > { %526 = vst [vmem:[#allocation1 + $0x7] ss:$9 sm:$0xff] %v499_v35 }
  0x71   : > { %v527_v38 = vld [vmem:[#allocation1] sm:$0xff] }
  0x72   : > { %528 = vrot.lane.b32.xlu1 %v527_v38, %s1467_s8  ;;  %574 = vst [vmem:[#allocation1] ss:$9 sm:$0xff] %v554_v36 }
  0x73   : > { %576 = vst [vmem:[#allocation1 + $0x1] ss:$9 sm:$0xff] %v555_v37 }
  0x74   : > { %578 = vst [vmem:[#allocation1 + $0x2] ss:$9 sm:$0xff] %v556_v39 }
  0x75   : > { %580 = vst [vmem:[#allocation1 + $0x3] ss:$9 sm:$0xff] %v557_v40 }
  0x76   : > { %582 = vst [vmem:[#allocation1 + $0x4] ss:$9 sm:$0xff] %v558_v41 }
  0x77   : > { %584 = vst [vmem:[#allocation1 + $0x5] ss:$9 sm:$0xff] %v559_v42 }
  0x78   : > { %586 = vst [vmem:[#allocation1 + $0x6] ss:$9 sm:$0xff] %v560_v43 }
  0x79   : > { %588 = vst [vmem:[#allocation1 + $0x7] ss:$9 sm:$0xff] %v561_v44 }
  0x7a   : > { %564 = vrot.lane.b32.xlu1 %v1618_v10, %s1468_s11 }
  0x80   : > { %v589_v47 = vld [vmem:[#allocation1] sm:$0xff] }
  0x81   : > { %636 = vst [vmem:[#allocation1] ss:$9 sm:$0xff] %v616_v45  ;;  %590 = vrot.lane.b32.xlu2 %v589_v47, %s1469_s9 }
  0x82   : > { %638 = vst [vmem:[#allocation1 + $0x1] ss:$9 sm:$0xff] %v617_v46  ;;  %626 = vrot.lane.b32.xlu1 %v1618_v10, %s1470_s27 }
  0x83   : > { %640 = vst [vmem:[#allocation1 + $0x2] ss:$9 sm:$0xff] %v618_v48 }
  0x84   : > { %642 = vst [vmem:[#allocation1 + $0x3] ss:$9 sm:$0xff] %v619_v49 }
  0x85   : > { %644 = vst [vmem:[#allocation1 + $0x4] ss:$9 sm:$0xff] %v620_v50 }
  0x86   : > { %646 = vst [vmem:[#allocation1 + $0x5] ss:$9 sm:$0xff] %v621_v51 }
  0x87   : > { %648 = vst [vmem:[#allocation1 + $0x6] ss:$9 sm:$0xff] %v622_v52 }
  0x88   : > { %650 = vst [vmem:[#allocation1 + $0x7] ss:$9 sm:$0xff] %v623_v53 }
  0x8f   : > { %v651_v56 = vld [vmem:[#allocation1] sm:$0xff] }
  0x90   : > { %698 = vst [vmem:[#allocation1] ss:$9 sm:$0xff] %v678_v54 }
  0x91   : > { %700 = vst [vmem:[#allocation1 + $0x1] ss:$9 sm:$0xff] %v679_v55 }
  0x92   : > { %702 = vst [vmem:[#allocation1 + $0x2] ss:$9 sm:$0xff] %v680_v57 }
  0x93   : > { %704 = vst [vmem:[#allocation1 + $0x3] ss:$9 sm:$0xff] %v681_v58 }
  0x94   : > { %706 = vst [vmem:[#allocation1 + $0x4] ss:$9 sm:$0xff] %v682_v59 }
  0x95   : > { %708 = vst [vmem:[#allocation1 + $0x5] ss:$9 sm:$0xff] %v683_v60  ;;  %v340_v20 = vpop.permute.xlu2 %339 }
  0x96   : > { %710 = vst [vmem:[#allocation1 + $0x6] ss:$9 sm:$0xff] %v684_v61 }
  0x97   : > { %712 = vst [vmem:[#allocation1 + $0x7] ss:$9 sm:$0xff] %v685_v62 }
  0x9d   : > { %v503_v22 = vpop.permute.xlu2 %502 }
  0x9e   : > { %v713_v1 = vld [vmem:[#allocation1] sm:$0xff] }
  0x9f   : > { %714 = vrot.lane.b32.xlu0 %v713_v1, %s1471_s29  ;;  %760 = vst [vmem:[#allocation1] ss:$9 sm:$0xff] %v740_v63 }
  0xa0   : > { %762 = vst [vmem:[#allocation1 + $0x1] ss:$9 sm:$0xff] %v741_v0 }
  0xa1   : > { %764 = vst [vmem:[#allocation1 + $0x2] ss:$9 sm:$0xff] %v742_v2 }
  0xa2   : > { %766 = vst [vmem:[#allocation1 + $0x3] ss:$9 sm:$0xff] %v743_v3 }
  0xa3   : > { %768 = vst [vmem:[#allocation1 + $0x4] ss:$9 sm:$0xff] %v744_v4 }
  0xa4   : > { %770 = vst [vmem:[#allocation1 + $0x5] ss:$9 sm:$0xff] %v745_v5 }
  0xa5   : > { %772 = vst [vmem:[#allocation1 + $0x6] ss:$9 sm:$0xff] %v746_v6  ;;  %v751_v24 = vpop.permute.xlu2 %750 }
  0xa6   : > { %774 = vst [vmem:[#allocation1 + $0x7] ss:$9 sm:$0xff] %v747_v7 }
  0xac   : > { %v689_v13 = vpop.permute.xlu1 %688  ;;  %v441_v23 = vpop.permute.xlu0 %440 }
  0xad   : > { %v775_v11 = vld [vmem:[#allocation1] sm:$0xff] }
  0xae   : > { %776 = vrot.lane.b32.xlu0 %v775_v11, %s1472_s6  ;;  %822 = vst [vmem:[#allocation1] ss:$9 sm:$0xff] %v802_v8 }
  0xaf   : > { %824 = vst [vmem:[#allocation1 + $0x1] ss:$9 sm:$0xff] %v803_v9 }
  0xb0   : > { %826 = vst [vmem:[#allocation1 + $0x2] ss:$9 sm:$0xff] %v804_v12 }
  0xb1   : > { %828 = vst [vmem:[#allocation1 + $0x3] ss:$9 sm:$0xff] %v805_v14 }
  0xb2   : > { %830 = vst [vmem:[#allocation1 + $0x4] ss:$9 sm:$0xff] %v806_v15 }
  0xb3   : > { %832 = vst [vmem:[#allocation1 + $0x5] ss:$9 sm:$0xff] %v807_v16 }
  0xb4   : > { %834 = vst [vmem:[#allocation1 + $0x6] ss:$9 sm:$0xff] %v808_v17 }
  0xb5   : > { %836 = vst [vmem:[#allocation1 + $0x7] ss:$9 sm:$0xff] %v809_v18 }
  0xb6   : > { %652 = vrot.lane.b32.xlu0 %v651_v56, %s1473_s12 }
  0xb7   : > { %v366_v19 = vpop.permute.xlu1 %365 }
  0xb8   : > { %386 = vmatpush.msra.mxu0 %v366_v19 }
  0xb9   : > { %1250 = vmatmul.msk.f32.vlgmr.msra.gmra.mxu0 %vm368_vm0, %v340_v20 }
  0xbc   : > { %v837_v21 = vld [vmem:[#allocation1] sm:$0xff] }
  0xbd   : > { %838 = vrot.lane.b32.xlu2 %v837_v21, %s1474_s15 }
  0xbe   : > { %812 = vrot.lane.b32.xlu0 %v1618_v10, %s1475_s13 }
  0xd2   : > { %v427_v34 = vpop.f32.mrf.mxu1 }
  0xd5   : > { %v467_v25 = vpop.permute.xlu0 %466 }
  0xd6   : > { %486 = vmatpush.msra.mxu2 %v467_v25 }
  0xd7   : > { %1252 = vmatmul.msk.f32.vlgmr.msra.gmra.mxu2 %vm368_vm0, %v441_v23 }
  0xdb   : > { %v591_v26 = vpop.permute.xlu2 %590 }
  0xdc   : > { %610 = vmatpush.msrb.mxu0 %v591_v26 }
  0xe4   : > { %v529_v27 = vpop.permute.xlu1 %528 }
  0xe5   : > { %548 = vmatpush.msra.mxu3 %v529_v27 }
  0xe6   : > { %1253 = vmatmul.msk.f32.vlgmr.msra.gmra.mxu3 %vm368_vm0, %v503_v22 }
  0xec   : > { %v565_v28 = vpop.permute.xlu1 %564 }
  0xed   : > { %1254 = vmatmul.msk.f32.vlgmr.msrb.gmra.mxu0 %vm368_vm0, %v565_v28 }
  0xf4   : > { %v627_v31 = vpop.permute.xlu1 %626 }
 0x111   : > { %v715_v29 = vpop.permute.xlu0 %714 }
 0x112   : > { %734 = vmatpush.msrb.mxu2 %v715_v29 }
 0x113   : > { %1256 = vmatmul.msk.f32.vlgmr.msrb.gmra.mxu2 %vm368_vm0, %v689_v13 }
 0x117   : > { %v839_v10 = vpop.permute.xlu2 %838 }
 0x118   : > { %858 = vmatpush.msra.mxu0 %v839_v10 }
 0x120   : > { %v777_v30 = vpop.permute.xlu0 %776 }
 0x121   : > { %796 = vmatpush.msrb.mxu3 %v777_v30 }
 0x122   : > { %1257 = vmatmul.msk.f32.vlgmr.msrb.gmra.mxu3 %vm368_vm0, %v751_v24 }
 0x128   : > { %v653_v32 = vpop.permute.xlu0 %652 }
 0x129   : > { %672 = vmatpush.msrb.mxu1 %v653_v32 }
 0x12a   : > { %1255 = vmatmul.msk.f32.vlgmr.msrb.gmra.mxu1 %vm368_vm0, %v627_v31 }
 0x130   : > { %v813_v33 = vpop.permute.xlu0 %812 }
 0x131   : > { %1258 = vmatmul.msk.f32.vlgmr.msra.gmra.mxu0 %vm368_vm0, %v813_v33 }
 0x136   : > { %v388_v35 = vpop.f32.mrf.mxu0 }
 0x137   : > { %v428_v36 = vadd.f32 %v427_v34, %v388_v35 }
 0x15a   : > { %v488_v37 = vpop.f32.mrf.mxu2 }
 0x15b   : > { %v491_v38 = vadd.f32 %v488_v37, %v428_v36 }
 0x169   : > { %v550_v39 = vpop.f32.mrf.mxu3 }
 0x16a   : > { %v553_v40 = vadd.f32 %v550_v39, %v491_v38  ;;  %v612_v41 = vpop.f32.mrf.mxu0 }
 0x16c   : > { %v615_v42 = vadd.f32 %v612_v41, %v553_v40 }
 0x196   : > { %v736_v45 = vpop.f32.mrf.mxu2 }
 0x1a5   : > { %v798_v47 = vpop.f32.mrf.mxu3 }
 0x1a7   : > { %v674_v43 = vpop.f32.mrf.mxu1 }
 0x1a8   : > { %v677_v44 = vadd.f32 %v674_v43, %v615_v42 }
 0x1aa   : > { %v739_v46 = vadd.f32 %v736_v45, %v677_v44 }
 0x1ab   : > { %867 = sbr.rel (%p1259_p4) target bundleno = 441 (0x1b9), region = 77 }
 0x1ac   : > { %v801_v48 = vadd.f32 %v798_v47, %v739_v46 }
 0x1ae   : > { %v860_v49 = vpop.f32.mrf.mxu0 }
 0x1af   : > { %v863_v50 = vadd.f32 %v860_v49, %v801_v48 }
 0x1b0   : > { %vm868_vm1 = vcmask 647168   ;;  %v1476_v51 = vmov 0.0  }
 0x1b1   : > { %869 = vst.msk [vmem:[%s1713_s28] sm:$0x1] %vm868_vm1, %v1476_v51 }
 0x1b2   : > { %870 = vst.msk [vmem:[%s1713_s28 + $0x1] sm:$0x1] %vm868_vm1, %v1476_v51 }
 0x1b3   : > { %871 = vst.msk [vmem:[%s1713_s28 + $0x2] sm:$0x1] %vm868_vm1, %v1476_v51 }
 0x1b4   : > { %872 = vst.msk [vmem:[%s1713_s28 + $0x3] sm:$0x1] %vm868_vm1, %v1476_v51 }
 0x1b5   : > { %873 = vst.msk [vmem:[%s1713_s28 + $0x4] sm:$0x1] %vm868_vm1, %v1476_v51 }
 0x1b6   : > { %874 = vst.msk [vmem:[%s1713_s28 + $0x5] sm:$0x1] %vm868_vm1, %v1476_v51 }
 0x1b7   : > { %875 = vst.msk [vmem:[%s1713_s28 + $0x6] sm:$0x1] %vm868_vm1, %v1476_v51 }
 0x1b8   : > { %876 = vst.msk [vmem:[%s1713_s28 + $0x7] sm:$0x1] %vm868_vm1, %v1476_v51 }
 0x1b9 PF: > { %v877_v52 = vld [vmem:[%s1713_s28] sm:$0x1]  ;;  %vm908_vm2 = vcmask 647168   ;;  %v878_v53 = vld [vmem:[%s1713_s28 + $0x1] sm:$0x1]  ;;  %v886_v54 = vrot.slane %v863_v50, 1 }
 0x1ba   : > { %v900_v55 = vadd.f32 %v877_v52, %v863_v50  ;;  %v879_v56 = vld [vmem:[%s1713_s28 + $0x2] sm:$0x1]  ;;  %v887_v57 = vrot.slane %v863_v50, 2  ;;  %v888_v59 = vrot.slane %v863_v50, 3  ;;  %v889_v62 = vrot.slane %v863_v50, 4  ;;  %p1260_p5 = scmp.ne.s32.totalorder %s1434_s19, 2 }
 0x1bb   : > { %v880_v58 = vld [vmem:[%s1713_s28 + $0x3] sm:$0x1]  ;;  %v901_v60 = vadd.f32 %v886_v54, %v878_v53  ;;  %v890_v0 = vrot.slane %v863_v50, 5  ;;  %v891_v4 = vrot.slane %v863_v50, 6  ;;  %v892_v5 = vrot.slane %v863_v50, 7 }
 0x1bc   : > { %v881_v61 = vld [vmem:[%s1713_s28 + $0x4] sm:$0x1]  ;;  %909 = vst.msk [vmem:[%s1713_s28] sm:$0x1] %vm908_vm2, %v900_v55  ;;  %v902_v1 = vadd.f32 %v887_v57, %v879_v56  ;;  %v903_v2 = vadd.f32 %v888_v59, %v880_v58 }
 0x1bd   : > { %v882_v63 = vld [vmem:[%s1713_s28 + $0x5] sm:$0x1]  ;;  %910 = vst.msk [vmem:[%s1713_s28 + $0x1] sm:$0x1] %vm908_vm2, %v901_v60  ;;  %v904_v6 = vadd.f32 %v889_v62, %v881_v61 }
 0x1be   : > { %v883_v3 = vld [vmem:[%s1713_s28 + $0x6] sm:$0x1]  ;;  %v905_v7 = vadd.f32 %v890_v0, %v882_v63  ;;  %911 = vst.msk [vmem:[%s1713_s28 + $0x2] sm:$0x1] %vm908_vm2, %v902_v1 }
 0x1bf   : > { %v884_v8 = vld [vmem:[%s1713_s28 + $0x7] sm:$0x1]  ;;  %v906_v9 = vadd.f32 %v891_v4, %v883_v3  ;;  %912 = vst.msk [vmem:[%s1713_s28 + $0x3] sm:$0x1] %vm908_vm2, %v903_v2  ;;  %920 = sbr.rel (%p1260_p5) target bundleno = 605 (0x25d), region = 81 }
 0x1c0   : > { %v907_v11 = vadd.f32 %v892_v5, %v884_v8  ;;  %913 = vst.msk [vmem:[%s1713_s28 + $0x4] sm:$0x1] %vm908_vm2, %v904_v6 }
 0x1c1   : > { %914 = vst.msk [vmem:[%s1713_s28 + $0x5] sm:$0x1] %vm908_vm2, %v905_v7 }
 0x1c2   : > { %915 = vst.msk [vmem:[%s1713_s28 + $0x6] sm:$0x1] %vm908_vm2, %v906_v9 }
 0x1c3   : > { %916 = vst.msk [vmem:[%s1713_s28 + $0x7] sm:$0x1] %vm908_vm2, %v907_v11 }
 0x1c4   : > { %v921_v12 = vld [vmem:[%s1713_s28] sm:$0x1]  ;;  %v922_v14 = vld [vmem:[%s1713_s28 + $0x1] sm:$0x1]  ;;  %vm980_vm3 = vcmask 654336   ;;  %vm984_vm4 = vcmask 7168  }
 0x1c5   : > { %v1371_v13 = vld [vmem:[%s1814_s2] ss:$0 sm:$0xff]  ;;  %v923_v15 = vld [vmem:[%s1713_s28 + $0x2] sm:$0x1]  ;;  %vm1022_vm5 = vcmask 15368  }
 0x1c6   : > { %v924_v16 = vld [vmem:[%s1713_s28 + $0x3] sm:$0x1]  ;;  %v933_v18 = vrot.slane %v1371_v13, 1  ;;  %v934_v19 = vrot.slane %v1371_v13, 2  ;;  %v935_v20 = vrot.slane %v1371_v13, 3  ;;  %v936_v21 = vrot.slane %v1371_v13, 4 }
 0x1c7   : > { %v925_v17 = vld [vmem:[%s1713_s28 + $0x4] sm:$0x1]  ;;  %v937_v23 = vrot.slane %v1371_v13, 5  ;;  %v938_v24 = vrot.slane %v1371_v13, 6  ;;  %v947_v25 = vmul.f32 %v1371_v13, %v921_v12  ;;  %v939_v27 = vrot.slane %v1371_v13, 7 }
 0x1c8   : > { %v926_v22 = vld [vmem:[%s1713_s28 + $0x5] sm:$0x1]  ;;  %v948_v28 = vmul.f32 %v933_v18, %v922_v14  ;;  %v949_v29 = vmul.f32 %v934_v19, %v923_v15  ;;  %v950_v10 = vmul.f32 %v935_v20, %v924_v16  ;;  %v951_v31 = vmul.f32 %v936_v21, %v925_v17 }
 0x1c9   : > { %v927_v26 = vld [vmem:[%s1713_s28 + $0x6] sm:$0x1]  ;;  %963 = vst [vmem:[#allocation1] ss:$9 sm:$0xff] %v947_v25  ;;  %v952_v32 = vmul.f32 %v937_v23, %v926_v22  ;;  %v986_v35 = vmul.f32 %v947_v25, %v947_v25 }
 0x1ca   : > { %v928_v30 = vld [vmem:[%s1713_s28 + $0x7] sm:$0x1]  ;;  %965 = vst [vmem:[#allocation1 + $0x1] ss:$9 sm:$0xff] %v948_v28  ;;  %v953_v33 = vmul.f32 %v938_v24, %v927_v26  ;;  %v987_v36 = vmul.f32 %v948_v28, %v948_v28  ;;  %v988_v37 = vmul.f32 %v949_v29, %v949_v29  ;;  %v989_v39 = vmul.f32 %v950_v10, %v950_v10 }
 0x1cb   : > { %967 = vst [vmem:[#allocation1 + $0x2] ss:$9 sm:$0xff] %v949_v29  ;;  %v954_v34 = vmul.f32 %v939_v27, %v928_v30  ;;  %v990_v41 = vmul.f32 %v951_v31, %v951_v31  ;;  %v991_v42 = vmul.f32 %v952_v32, %v952_v32 }
 0x1cc   : > { %969 = vst [vmem:[#allocation1 + $0x3] ss:$9 sm:$0xff] %v950_v10  ;;  %v992_v43 = vmul.f32 %v953_v33, %v953_v33 }
 0x1cd   : > { %971 = vst [vmem:[#allocation1 + $0x4] ss:$9 sm:$0xff] %v951_v31  ;;  %v993_v44 = vmul.f32 %v954_v34, %v954_v34 }
 0x1ce   : > { %973 = vst [vmem:[#allocation1 + $0x5] ss:$9 sm:$0xff] %v952_v32 }
 0x1cf   : > { %975 = vst [vmem:[#allocation1 + $0x6] ss:$9 sm:$0xff] %v953_v33 }
 0x1d0   : > { %977 = vst [vmem:[#allocation1 + $0x7] ss:$9 sm:$0xff] %v954_v34 }
 0x1d7   : > { %v978_v38 = vld [vmem:[#allocation1] sm:$0xff] }
 0x1d8   : > { %v981_v40 = vsel %vm980_vm3, %v978_v38, 0.0  ;;  %1002 = vst [vmem:[#allocation1] ss:$9 sm:$0xff] %v986_v35 }
 0x1d9   : > { %982 = vadd.xlane.f32.xlu0 %v981_v40  ;;  %1004 = vst [vmem:[#allocation1 + $0x1] ss:$9 sm:$0xff] %v987_v36 }
 0x1da   : > { %1006 = vst [vmem:[#allocation1 + $0x2] ss:$9 sm:$0xff] %v988_v37 }
 0x1db   : > { %1008 = vst [vmem:[#allocation1 + $0x3] ss:$9 sm:$0xff] %v989_v39 }
 0x1dc   : > { %1010 = vst [vmem:[#allocation1 + $0x4] ss:$9 sm:$0xff] %v990_v41 }
 0x1dd   : > { %1012 = vst [vmem:[#allocation1 + $0x5] ss:$9 sm:$0xff] %v991_v42 }
 0x1de   : > { %1014 = vst [vmem:[#allocation1 + $0x6] ss:$9 sm:$0xff] %v992_v43 }
 0x1df   : > { %1016 = vst [vmem:[#allocation1 + $0x7] ss:$9 sm:$0xff] %v993_v44 }
 0x1e6   : > { %v1017_v45 = vld [vmem:[#allocation1] sm:$0xff] }
 0x1e7   : > { %v1019_v46 = vsel %vm980_vm3, %v1017_v45, 0.0 }
 0x1e8   : > { %1020 = vadd.xlane.f32.xlu0 %v1019_v46 }
 0x24c   : > { %v983_v47 = vpop.xlane.xlu0 %982 }
 0x24d   : > { %985 = vst.msk [vmem:[%s1657_s7] sm:$0xff] %vm984_vm4, %v983_v47 }
 0x25b   : > { %v1021_v48 = vpop.xlane.xlu0 %1020 }
 0x25c   : > { %1023 = vst.msk [vmem:[%s1657_s7] sm:$0xff] %vm1022_vm5, %v1021_v48 }
 0x25d PF: > { %1038 = sbr.rel (!%p1585_p8) target bundleno = 616 (0x268), region = 85  ;;  %s1262_s19 = sshll.u32 (%p1585_p8), %s1442_s21, 6  ;;  %v1058_v49 = vld [vmem:[%s1713_s28] sm:$0x1] (%p1585_p8)  ;;  %v1060_v50 = vld [vmem:[%s1713_s28 + $0x1] sm:$0x1] (%p1585_p8) }
 0x25e   : > { %s1040_s17 = sadd.s32 (%p1585_p8), %s1438_s20, %s1262_s19  ;;  %v1062_v51 = vld [vmem:[%s1713_s28 + $0x2] sm:$0x1] (%p1585_p8) }
 0x25f   : > { %s1041_s8 = scalar_lea.vmem (%p1585_p8), %s1815_s3, %s1040_s17  ;;  %v1064_v52 = vld [vmem:[%s1713_s28 + $0x3] sm:$0x1] (%p1585_p8) }
 0x260   : > { %1059 = vst [vmem:[%s1041_s8] sm:$0x1] (%p1585_p8), %v1058_v49  ;;  %v1066_v53 = vld [vmem:[%s1713_s28 + $0x4] sm:$0x1] (%p1585_p8) }
 0x261   : > { %1061 = vst [vmem:[%s1041_s8 + $0x8] sm:$0x1] (%p1585_p8), %v1060_v50  ;;  %v1068_v54 = vld [vmem:[%s1713_s28 + $0x5] sm:$0x1] (%p1585_p8) }
 0x262   : > { %1063 = vst [vmem:[%s1041_s8 + $0x10] sm:$0x1] %v1062_v51  ;;  %v1070_v55 = vld [vmem:[%s1713_s28 + $0x6] sm:$0x1] }
 0x263   : > { %1065 = vst [vmem:[%s1041_s8 + $0x18] sm:$0x1] %v1064_v52  ;;  %v1072_v56 = vld [vmem:[%s1713_s28 + $0x7] sm:$0x1] }
 0x264   : > { %1067 = vst [vmem:[%s1041_s8 + $0x20] sm:$0x1] %v1066_v53 }
 0x265   : > { %1069 = vst [vmem:[%s1041_s8 + $0x28] sm:$0x1] %v1068_v54 }
 0x266   : > { %1071 = vst [vmem:[%s1041_s8 + $0x30] sm:$0x1] %v1070_v55 }
 0x267   : > { %1073 = vst [vmem:[%s1041_s8 + $0x38] sm:$0x1] %v1072_v56 }
 0x268 PF: > { %s15_s25 = sadd.s32 1, %s1458_s25   ;;  %s1827_s19 = sld [smem:[#allocation4_spill]] }
 0x269   : > { %p12_p6 = scmp.ge.s32.totalorder %s15_s25, 50   ;;  %s1828_s10 = sld [smem:[#allocation5_spill]] }
 0x26a   : > { %s1829_s11 = sld [smem:[#allocation6_spill]]  ;;  %s1831_s15 = smov %s1422_s16 }
 0x26b   : > { %s1830_s9 = sld [smem:[#allocation7_spill]]  ;;  %s1832_s16 = smov %s1596_s22 }
 0x26c   : > { %s1833_s17 = smov %s1430_s18  ;;  %s1834_s18 = smov %s1593_s26 }
 0x26d   : > { %s1835_s20 = smov %s1450_s23  ;;  %s1836_s21 = smov %s1454_s24 }
 0x26e   :  { %14 = sbr.rel (!%p12_p6) target bundleno = 6 (0x6), region = 249 }
 0x26f   : > { %s1837_s22 = smov %s1828_s10 }
 0x270   : > { %s1838_s23 = smov %s1829_s11 }
 0x271   : > { %s1839_s24 = smov %s1830_s9 }

</bundles_post_ra>
